<compile_context>
chip_gen: v7x
topology: tpu7x:2x2x1
jax: 0.10.0
libtpu: 0.0.40
codegen_flags: <defaults>
</compile_context>

<pallas_src>
import functools

import jax
import jax.numpy as jnp
from jax.experimental import pallas as pl
from jax.experimental.pallas import tpu as pltpu

EPS = 1e-5                       # nn.BatchNorm2d default eps
LANE = 128                       # lane width: last dims padded to multiples of this
VMEM_LIMIT = 48 * 1024 * 1024    # > 16/32 MiB scoped defaults, < v7x 64 MiB physical


def _round_up(x, m):
    return (x + m - 1) // m * m


# ---------------------------------------------------------------------------
# Pallas kernels
# ---------------------------------------------------------------------------
def _accumulate_stats(y, sum_ref, ssq_ref):
    """Per-channel sum / sum-of-squares accumulation across the row-tile grid."""
    @pl.when(pl.program_id(0) == 0)
    def _():
        sum_ref[...] = jnp.zeros_like(sum_ref)
        ssq_ref[...] = jnp.zeros_like(ssq_ref)
    sum_ref[...] += jnp.sum(y, axis=0, keepdims=True)
    ssq_ref[...] += jnp.sum(y * y, axis=0, keepdims=True)


def _mm_stats_kernel(p_ref, w_ref, y_ref, sum_ref, ssq_ref):
    """conv1: y = patches @ W (bf16 MXU, f32 accum) + BN batch-stat accumulation.
    Conv bias is omitted (cancelled exactly by the BN mean subtraction)."""
    y = jnp.dot(p_ref[...], w_ref[...], preferred_element_type=jnp.float32)
    y_ref[...] = y
    _accumulate_stats(y, sum_ref, ssq_ref)


def _make_bn_mm_stats_kernel(tm, r_valid):
    """conv2: fuse the previous conv's folded BN-apply + ReLU (per patch column)
    with the bf16 matmul + BN batch-stat accumulation. Padded rows (>= r_valid)
    are masked out of the output/stats because relu(shift) != 0 on zero patches."""
    need_mask = (r_valid % tm) != 0

    def kernel(p_ref, sc_ref, sh_ref, w_ref, y_ref, sum_ref, ssq_ref):
        h = jnp.maximum(p_ref[...].astype(jnp.float32) * sc_ref[...] + sh_ref[...], 0.0)
        y = jnp.dot(h.astype(jnp.bfloat16), w_ref[...],
                    preferred_element_type=jnp.float32)
        if need_mask:
            row = (jax.lax.broadcasted_iota(jnp.int32, y.shape, 0)
                   + pl.program_id(0) * tm)
            y = jnp.where(row < r_valid, y, 0.0)
        y_ref[...] = y
        _accumulate_stats(y, sum_ref, ssq_ref)

    return kernel


def _bn_mm_bias_kernel(x_ref, sc_ref, sh_ref, w_ref, b_ref, o_ref):
    """ConvTranspose2d(k=2, s=2) as one matmul, with conv2's folded BN-apply + ReLU
    fused in front (saves a full HBM round trip of the mid activation)."""
    h = jnp.maximum(x_ref[...] * sc_ref[...] + sh_ref[...], 0.0)
    o_ref[...] = (jnp.dot(h.astype(jnp.bfloat16), w_ref[...],
                          preferred_element_type=jnp.float32) + b_ref[...])


# ---------------------------------------------------------------------------
# pallas_call wrappers (row-tiled, pipelined)
# ---------------------------------------------------------------------------
def _conv_stats_call(p, w, tm, sc_cols=None, sh_cols=None, r_valid=None):
    Rp, Kp = p.shape
    Cp = w.shape[1]
    grid = (Rp // tm,)

    p_spec = pl.BlockSpec((tm, Kp), lambda i: (i, 0))
    col_spec = pl.BlockSpec((1, Kp), lambda i: (0, 0))     # resident (1, K) vectors
    w_spec = pl.BlockSpec((Kp, Cp), lambda i: (0, 0))      # weights stay VMEM-resident
    y_spec = pl.BlockSpec((tm, Cp), lambda i: (i, 0))
    c_spec = pl.BlockSpec((1, Cp), lambda i: (0, 0))       # grid-resident accumulators

    out_shape = (jax.ShapeDtypeStruct((Rp, Cp), jnp.float32),
                 jax.ShapeDtypeStruct((1, Cp), jnp.float32),
                 jax.ShapeDtypeStruct((1, Cp), jnp.float32))
    cparams = pltpu.CompilerParams(dimension_semantics=("arbitrary",),
                                   vmem_limit_bytes=VMEM_LIMIT)

    if sc_cols is None:
        return pl.pallas_call(
            _mm_stats_kernel, grid=grid,
            in_specs=[p_spec, w_spec],
            out_specs=(y_spec, c_spec, c_spec),
            out_shape=out_shape, compiler_params=cparams,
        )(p, w)

    return pl.pallas_call(
        _make_bn_mm_stats_kernel(tm, r_valid), grid=grid,
        in_specs=[p_spec, col_spec, col_spec, w_spec],
        out_specs=(y_spec, c_spec, c_spec),
        out_shape=out_shape, compiler_params=cparams,
    )(p, sc_cols, sh_cols, w)


def _bn_matmul_call(x, sc, sh, w, b, tm):
    Rp, Cp = x.shape
    Ct = w.shape[1]
    return pl.pallas_call(
        _bn_mm_bias_kernel, grid=(Rp // tm,),
        in_specs=[pl.BlockSpec((tm, Cp), lambda i: (i, 0)),
                  pl.BlockSpec((1, Cp), lambda i: (0, 0)),
                  pl.BlockSpec((1, Cp), lambda i: (0, 0)),
                  pl.BlockSpec((Cp, Ct), lambda i: (0, 0)),
                  pl.BlockSpec((1, Ct), lambda i: (0, 0))],
        out_specs=pl.BlockSpec((tm, Ct), lambda i: (i, 0)),
        out_shape=jax.ShapeDtypeStruct((Rp, Ct), jnp.float32),
        compiler_params=pltpu.CompilerParams(
            dimension_semantics=("parallel",),     # shards across both TCs on v7x
            vmem_limit_bytes=VMEM_LIMIT),
    )(x, sc, sh, w, b)


# ---------------------------------------------------------------------------
# Glue (plain JAX): im2col, BN affine fold, packing / interleave
# ---------------------------------------------------------------------------
def _im2col_3x3(x):
    """x: (N,H,W,C) -> ((N*(H-2)*(W-2), 9*C), (N, Ho, Wo)); cols ordered (kh,kw,c)."""
    N, H, W, C = x.shape
    Ho, Wo = H - 2, W - 2
    cols = [x[:, i:i + Ho, j:j + Wo, :] for i in range(3) for j in range(3)]
    p = jnp.stack(cols, axis=3)                       # (N, Ho, Wo, 9, C)
    return p.reshape(N * Ho * Wo, 9 * C), (N, Ho, Wo)


def _fold_bn(s, ss, n_rows, gamma_p, beta_p):
    mean = s / n_rows
    var = jnp.maximum(ss / n_rows - mean * mean, 0.0)  # biased var (training-mode BN)
    scale = gamma_p * jax.lax.rsqrt(var + EPS)
    shift = beta_p - mean * scale
    return scale, shift


def decoder_block_forward(x_nchw, params, row_tile=512):
    """Equivalent of _DecoderBlock.forward (module in default training mode)."""
    (w1, b1, g1, be1, w2, b2, g2, be2, wt, bt) = params
    del b1, b2   # bias before training-mode BN is cancelled by the mean subtraction
    tm = row_tile

    N, Cin, H, W = x_nchw.shape
    Cmid = w1.shape[-1]
    Cout = wt.shape[-1]
    Cp = _round_up(Cmid, LANE)

    x = jnp.transpose(x_nchw, (0, 2, 3, 1)).astype(jnp.float32)   # NCHW -> NHWC

    # ---- conv1 (+ BN1 batch stats) ---------------------------------------
    p1, (_, Ho1, Wo1) = _im2col_3x3(x)
    R1, K1 = p1.shape
    K1p, R1p = _round_up(K1, LANE), _round_up(R1, tm)
    p1 = jnp.pad(p1, ((0, R1p - R1), (0, K1p - K1))).astype(jnp.bfloat16)
    w1p = jnp.pad(w1.reshape(K1, Cmid),
                  ((0, K1p - K1), (0, Cp - Cmid))).astype(jnp.bfloat16)
    y1, s1, ss1 = _conv_stats_call(p1, w1p, tm)
    sc1, sh1 = _fold_bn(s1, ss1, R1,
                        jnp.pad(g1, (0, Cp - Cmid)).reshape(1, Cp),
                        jnp.pad(be1, (0, Cp - Cmid)).reshape(1, Cp))

    # ---- conv2 (+ BN2 batch stats), BN1-apply + ReLU fused on the patches --
    h1_raw = y1[:R1, :Cmid].reshape(N, Ho1, Wo1, Cmid)   # pre-BN conv1 output
    p2, (_, Ho2, Wo2) = _im2col_3x3(h1_raw)
    R2, K2 = p2.shape
    K2p, R2p = _round_up(K2, LANE), _round_up(R2, tm)
    p2 = jnp.pad(p2, ((0, R2p - R2), (0, K2p - K2))).astype(jnp.bfloat16)
    sc1_cols = jnp.pad(jnp.tile(sc1[:, :Cmid], (1, 9)), ((0, 0), (0, K2p - K2)))
    sh1_cols = jnp.pad(jnp.tile(sh1[:, :Cmid], (1, 9)), ((0, 0), (0, K2p - K2)))
    w2p = jnp.pad(w2.reshape(K2, Cmid),
                  ((0, K2p - K2), (0, Cp - Cmid))).astype(jnp.bfloat16)
    y2, s2, ss2 = _conv_stats_call(p2, w2p, tm, sc1_cols, sh1_cols, R2)
    sc2, sh2 = _fold_bn(s2, ss2, R2,
                        jnp.pad(g2, (0, Cp - Cmid)).reshape(1, Cp),
                        jnp.pad(be2, (0, Cp - Cmid)).reshape(1, Cp))

    # ---- ConvTranspose2d(k=2, s=2), BN2-apply + ReLU fused -----------------
    Ct = _round_up(4 * Cout, LANE)
    # pack (kh, kw, cm, co) -> (cm, (kh*2+kw)*Cout + co), pad to lane-dense shape
    wt_p = jnp.transpose(wt.reshape(4, Cmid, Cout), (1, 0, 2)).reshape(Cmid, 4 * Cout)
    wt_p = jnp.pad(wt_p, ((0, Cp - Cmid), (0, Ct - 4 * Cout))).astype(jnp.bfloat16)
    bt_p = jnp.pad(jnp.tile(bt, 4), (0, Ct - 4 * Cout)).reshape(1, Ct)

    out = _bn_matmul_call(y2, sc2, sh2, wt_p, bt_p, tm)

    # interleave (kh, kw) into the upsampled spatial grid; NHWC -> NCHW
    y = out[:R2, :4 * Cout].reshape(N, Ho2, Wo2, 2, 2, Cout)
    y = jnp.transpose(y, (0, 1, 3, 2, 4, 5)).reshape(N, 2 * Ho2, 2 * Wo2, Cout)
    return jnp.transpose(y, (0, 3, 1, 2))


# ---------------------------------------------------------------------------
# Pure-JAX f32 reference (for correctness check)
# ---------------------------------------------------------------------------
def reference_forward(x_nchw, params):
    (w1, b1, g1, be1, w2, b2, g2, be2, wt, bt) = params
    x = jnp.transpose(x_nchw, (0, 2, 3, 1)).astype(jnp.float32)

    def conv(xx, w, b):
        y = jax.lax.conv_general_dilated(
            xx, w, window_strides=(1, 1), padding="VALID",
            dimension_numbers=("NHWC", "HWIO", "NHWC"))
        return y + b.reshape(1, 1, 1, -1)

    def bn_relu(y, g, be):
        m = jnp.mean(y, axis=(0, 1, 2), keepdims=True)
        v = jnp.mean((y - m) ** 2, axis=(0, 1, 2), keepdims=True)
        yn = (y - m) / jnp.sqrt(v + EPS)
        return jnp.maximum(yn * g.reshape(1, 1, 1, -1) + be.reshape(1, 1, 1, -1), 0.0)

    h = bn_relu(conv(x, w1, b1), g1, be1)
    h = bn_relu(conv(h, w2, b2), g2, be2)
    y = jnp.einsum("nhwc,uvco->nhwuvo", h, wt) + bt.reshape(1, 1, 1, 1, 1, -1)
    N, Hc, Wc, _ = h.shape
    Cout = wt.shape[-1]
    y = jnp.transpose(y, (0, 1, 3, 2, 4, 5)).reshape(N, 2 * Hc, 2 * Wc, Cout)
    return jnp.transpose(y, (0, 3, 1, 2))


# ---------------------------------------------------------------------------
# Deterministic parameter init (synthetic; matches module shapes)
# ---------------------------------------------------------------------------
def init_params(key, cin, cmid, cout):
    ks = jax.random.split(key, 12)

    def u(k, shape, fan_in):
        bound = 1.0 / (fan_in ** 0.5)
        return jax.random.uniform(k, shape, jnp.float32, -bound, bound)

    w1 = u(ks[0], (3, 3, cin, cmid), 9 * cin)        # Conv2d(in, mid, 3) weight (HWIO)
    b1 = u(ks[1], (cmid,), 9 * cin)
    g1 = jax.random.uniform(ks[2], (cmid,), jnp.float32, 0.5, 1.5)    # BN weight
    be1 = jax.random.uniform(ks[3], (cmid,), jnp.float32, -0.5, 0.5)  # BN bias
    w2 = u(ks[4], (3, 3, cmid, cmid), 9 * cmid)      # Conv2d(mid, mid, 3)
    b2 = u(ks[5], (cmid,), 9 * cmid)
    g2 = jax.random.uniform(ks[6], (cmid,), jnp.float32, 0.5, 1.5)
    be2 = jax.random.uniform(ks[7], (cmid,), jnp.float32, -0.5, 0.5)
    wt = u(ks[8], (2, 2, cmid, cout), 4 * cmid)      # ConvTranspose2d(mid, out, 2, 2)
    bt = u(ks[9], (cout,), 4 * cmid)
    return (w1, b1, g1, be1, w2, b2, g2, be2, wt, bt)


if __name__ == "__main__":
    key = jax.random.PRNGKey(0)
    kx, kp = jax.random.split(key)

    N, Cin, H, W = 2, 4, 16, 16
    Cmid, Cout = 8, 4

    x = jax.random.normal(kx, (N, Cin, H, W), jnp.float32)
    params = init_params(kp, Cin, Cmid, Cout)

    # small row tile so the toy shapes exercise multi-step grids, accumulation,
    # row padding and masking; sweep up toward 512 for realistic decoder sizes.
    fwd = jax.jit(functools.partial(decoder_block_forward, row_tile=128))
    out = jax.block_until_ready(fwd(x, params))

    ref = reference_forward(x, params)
    assert out.shape == (N, Cout, 2 * (H - 4), 2 * (W - 4)), out.shape
    err = float(jnp.max(jnp.abs(out - ref)))
    # bf16 MXU inputs (f32 accumulation) vs f32 reference -> relaxed tolerance
    if err < 5e-2:
        print("KERNEL_OK")
    else:
        print(f"MISMATCH max_abs_err={err}")
</pallas_src>

<mosaic_0001>
module attributes {stable_mosaic.version = 11 : i64} {
  func.func @_mm_stats_kernel(%arg0: i32, %arg1: memref<128x128xbf16, #tpu.memory_space<vmem>>, %arg2: memref<128x128xbf16, #tpu.memory_space<vmem>>, %arg3: memref<128x128xf32, #tpu.memory_space<vmem>>, %arg4: memref<1x128xf32, #tpu.memory_space<vmem>>, %arg5: memref<1x128xf32, #tpu.memory_space<vmem>>) attributes {dimension_semantics = [#tpu.dimension_semantics<arbitrary>], iteration_bounds = array<i64: 4>, scalar_prefetch = 0 : i64, scratch_operands = 0 : i64, tpu.core_type = #tpu.core_type<tc>, window_params = [{transform_indices = @transform_0, window_bounds = array<i64: 128, 128>}, {pipeline_mode = #tpu.pipeline_mode<synchronous>, transform_indices = @transform_1, window_bounds = array<i64: 128, 128>}, {transform_indices = @transform_2, window_bounds = array<i64: 128, 128>}, {pipeline_mode = #tpu.pipeline_mode<synchronous>, transform_indices = @transform_3, window_bounds = array<i64: 1, 128>}, {pipeline_mode = #tpu.pipeline_mode<synchronous>, transform_indices = @transform_4, window_bounds = array<i64: 1, 128>}]} {
    %c0 = arith.constant 0 : index
    %c0_0 = arith.constant 0 : index
    %0 = vector.load %arg1[%c0, %c0_0] : memref<128x128xbf16, #tpu.memory_space<vmem>>, vector<128x128xbf16>
    %c0_1 = arith.constant 0 : index
    %c0_2 = arith.constant 0 : index
    %1 = vector.load %arg2[%c0_1, %c0_2] : memref<128x128xbf16, #tpu.memory_space<vmem>>, vector<128x128xbf16>
    %cst = arith.constant dense<0.000000e+00> : vector<128x128xf32>
    %2 = tpu.matmul %0, %1, %cst {dimension_numbers = #tpu.dot_dimension_numbers<[1], [0], [0], [1], [0, 0, 1, 1], [], []>} : vector<128x128xbf16>, vector<128x128xbf16>, vector<128x128xf32> -> vector<128x128xf32>
    %c0_3 = arith.constant 0 : index
    %c0_4 = arith.constant 0 : index
    %3 = vector.load %arg3[%c0_3, %c0_4] : memref<128x128xf32, #tpu.memory_space<vmem>>, vector<128x128xf32>
    tpu.vector_store %arg3[%c0_3, %c0_4], %2 {strides = array<i32>} : memref<128x128xf32, #tpu.memory_space<vmem>>, vector<128x128xf32>,
    %c0_i32 = arith.constant 0 : i32
    %4 = arith.cmpi eq, %arg0, %c0_i32 : i32
    %5 = arith.extui %4 : i1 to i32
    %c0_i32_5 = arith.constant 0 : i32
    %6 = arith.cmpi ne, %5, %c0_i32_5 : i32
    scf.if %6 {
      %cst_16 = arith.constant 0.000000e+00 : f32
      %18 = vector.broadcast %cst_16 : f32 to vector<1x128xf32>
      %c0_17 = arith.constant 0 : index
      %c0_18 = arith.constant 0 : index
      %19 = vector.load %arg4[%c0_17, %c0_18] : memref<1x128xf32, #tpu.memory_space<vmem>>, vector<1x128xf32>
      tpu.vector_store %arg4[%c0_17, %c0_18], %18 {strides = array<i32>} : memref<1x128xf32, #tpu.memory_space<vmem>>, vector<1x128xf32>,
      %cst_19 = arith.constant 0.000000e+00 : f32
      %20 = vector.broadcast %cst_19 : f32 to vector<1x128xf32>
      %c0_20 = arith.constant 0 : index
      %c0_21 = arith.constant 0 : index
      %21 = vector.load %arg5[%c0_20, %c0_21] : memref<1x128xf32, #tpu.memory_space<vmem>>, vector<1x128xf32>
      tpu.vector_store %arg5[%c0_20, %c0_21], %20 {strides = array<i32>} : memref<1x128xf32, #tpu.memory_space<vmem>>, vector<1x128xf32>,
    } else {
    }
    %c0_6 = arith.constant 0 : index
    %c0_7 = arith.constant 0 : index
    %7 = vector.load %arg4[%c0_6, %c0_7] : memref<1x128xf32, #tpu.memory_space<vmem>>, vector<1x128xf32>
    %cst_8 = arith.constant dense<0.000000e+00> : vector<128xf32>
    %8 = vector.multi_reduction <add>, %2, %cst_8 [0] : vector<128x128xf32> to vector<128xf32>
    %9 = vector.shape_cast %8 : vector<128xf32> to vector<1x128xf32>
    %10 = arith.addf %7, %9 : vector<1x128xf32>
    %c0_9 = arith.constant 0 : index
    %c0_10 = arith.constant 0 : index
    %11 = vector.load %arg4[%c0_9, %c0_10] : memref<1x128xf32, #tpu.memory_space<vmem>>, vector<1x128xf32>
    tpu.vector_store %arg4[%c0_9, %c0_10], %10 {strides = array<i32>} : memref<1x128xf32, #tpu.memory_space<vmem>>, vector<1x128xf32>,
    %c0_11 = arith.constant 0 : index
    %c0_12 = arith.constant 0 : index
    %12 = vector.load %arg5[%c0_11, %c0_12] : memref<1x128xf32, #tpu.memory_space<vmem>>, vector<1x128xf32>
    %13 = arith.mulf %2, %2 : vector<128x128xf32>
    %cst_13 = arith.constant dense<0.000000e+00> : vector<128xf32>
    %14 = vector.multi_reduction <add>, %13, %cst_13 [0] : vector<128x128xf32> to vector<128xf32>
    %15 = vector.shape_cast %14 : vector<128xf32> to vector<1x128xf32>
    %16 = arith.addf %12, %15 : vector<1x128xf32>
    %c0_14 = arith.constant 0 : index
    %c0_15 = arith.constant 0 : index
    %17 = vector.load %arg5[%c0_14, %c0_15] : memref<1x128xf32, #tpu.memory_space<vmem>>, vector<1x128xf32>
    tpu.vector_store %arg5[%c0_14, %c0_15], %16 {strides = array<i32>} : memref<1x128xf32, #tpu.memory_space<vmem>>, vector<1x128xf32>,
    return
  }
  func.func @transform_0(%arg0: i32) -> (i32, i32) {
    %c0_i32 = arith.constant 0 : i32
    %c0_i32_0 = arith.constant 0 : i32
    return %arg0, %c0_i32 : i32, i32
  }
  func.func @transform_1(%arg0: i32) -> (i32, i32) {
    %c0_i32 = arith.constant 0 : i32
    %c0_i32_0 = arith.constant 0 : i32
    %c0_i32_1 = arith.constant 0 : i32
    return %c0_i32, %c0_i32_0 : i32, i32
  }
  func.func @transform_2(%arg0: i32) -> (i32, i32) {
    %c0_i32 = arith.constant 0 : i32
    %c0_i32_0 = arith.constant 0 : i32
    return %arg0, %c0_i32 : i32, i32
  }
  func.func @transform_3(%arg0: i32) -> (i32, i32) {
    %c0_i32 = arith.constant 0 : i32
    %c0_i32_0 = arith.constant 0 : i32
    %c0_i32_1 = arith.constant 0 : i32
    return %c0_i32, %c0_i32_0 : i32, i32
  }
  func.func @transform_4(%arg0: i32) -> (i32, i32) {
    %c0_i32 = arith.constant 0 : i32
    %c0_i32_0 = arith.constant 0 : i32
    %c0_i32_1 = arith.constant 0 : i32
    return %c0_i32, %c0_i32_0 : i32, i32
  }
}

module attributes {stable_mosaic.version = 11 : i64} {
  func.func @kernel(%arg0: i32, %arg1: memref<128x128xbf16, #tpu.memory_space<vmem>>, %arg2: memref<1x128xf32, #tpu.memory_space<vmem>>, %arg3: memref<1x128xf32, #tpu.memory_space<vmem>>, %arg4: memref<128x128xbf16, #tpu.memory_space<vmem>>, %arg5: memref<128x128xf32, #tpu.memory_space<vmem>>, %arg6: memref<1x128xf32, #tpu.memory_space<vmem>>, %arg7: memref<1x128xf32, #tpu.memory_space<vmem>>) attributes {dimension_semantics = [#tpu.dimension_semantics<arbitrary>], iteration_bounds = array<i64: 3>, scalar_prefetch = 0 : i64, scratch_operands = 0 : i64, tpu.core_type = #tpu.core_type<tc>, window_params = [{transform_indices = @transform_0, window_bounds = array<i64: 128, 128>}, {pipeline_mode = #tpu.pipeline_mode<synchronous>, transform_indices = @transform_1, window_bounds = array<i64: 1, 128>}, {pipeline_mode = #tpu.pipeline_mode<synchronous>, transform_indices = @transform_2, window_bounds = array<i64: 1, 128>}, {pipeline_mode = #tpu.pipeline_mode<synchronous>, transform_indices = @transform_3, window_bounds = array<i64: 128, 128>}, {transform_indices = @transform_4, window_bounds = array<i64: 128, 128>}, {pipeline_mode = #tpu.pipeline_mode<synchronous>, transform_indices = @transform_5, window_bounds = array<i64: 1, 128>}, {pipeline_mode = #tpu.pipeline_mode<synchronous>, transform_indices = @transform_6, window_bounds = array<i64: 1, 128>}]} {
    %c0 = arith.constant 0 : index
    %c0_0 = arith.constant 0 : index
    %0 = vector.load %arg1[%c0, %c0_0] : memref<128x128xbf16, #tpu.memory_space<vmem>>, vector<128x128xbf16>
    %1 = arith.extf %0 : vector<128x128xbf16> to vector<128x128xf32>
    %c0_1 = arith.constant 0 : index
    %c0_2 = arith.constant 0 : index
    %2 = vector.load %arg2[%c0_1, %c0_2] : memref<1x128xf32, #tpu.memory_space<vmem>>, vector<1x128xf32>
    %3 = vector.broadcast %2 : vector<1x128xf32> to vector<128x128xf32>
    %4 = arith.mulf %1, %3 : vector<128x128xf32>
    %c0_3 = arith.constant 0 : index
    %c0_4 = arith.constant 0 : index
    %5 = vector.load %arg3[%c0_3, %c0_4] : memref<1x128xf32, #tpu.memory_space<vmem>>, vector<1x128xf32>
    %6 = vector.broadcast %5 : vector<1x128xf32> to vector<128x128xf32>
    %7 = arith.addf %4, %6 : vector<128x128xf32>
    %cst = arith.constant 0.000000e+00 : f32
    %8 = vector.broadcast %cst : f32 to vector<128x128xf32>
    %9 = arith.maximumf %7, %8 : vector<128x128xf32>
    %10 = arith.truncf %9 : vector<128x128xf32> to vector<128x128xbf16>
    %c0_5 = arith.constant 0 : index
    %c0_6 = arith.constant 0 : index
    %11 = vector.load %arg4[%c0_5, %c0_6] : memref<128x128xbf16, #tpu.memory_space<vmem>>, vector<128x128xbf16>
    %cst_7 = arith.constant dense<0.000000e+00> : vector<128x128xf32>
    %12 = tpu.matmul %10, %11, %cst_7 {dimension_numbers = #tpu.dot_dimension_numbers<[1], [0], [0], [1], [0, 0, 1, 1], [], []>} : vector<128x128xbf16>, vector<128x128xbf16>, vector<128x128xf32> -> vector<128x128xf32>
    %13 = tpu.iota {dimensions = array<i32: 0>} : vector<128x128xi32>
    %c128_i32 = arith.constant 128 : i32
    %14 = arith.muli %arg0, %c128_i32 : i32
    %15 = vector.broadcast %14 : i32 to vector<128x128xi32>
    %16 = arith.addi %13, %15 : vector<128x128xi32>
    %c288_i32 = arith.constant 288 : i32
    %17 = vector.broadcast %c288_i32 : i32 to vector<128x128xi32>
    %18 = arith.cmpi slt, %16, %17 : vector<128x128xi32>
    %cst_8 = arith.constant 0.000000e+00 : f32
    %19 = vector.broadcast %cst_8 : f32 to vector<128x128xf32>
    %20 = arith.select %18, %12, %19 : vector<128x128xi1>, vector<128x128xf32>
    %c0_9 = arith.constant 0 : index
    %c0_10 = arith.constant 0 : index
    %21 = vector.load %arg5[%c0_9, %c0_10] : memref<128x128xf32, #tpu.memory_space<vmem>>, vector<128x128xf32>
    tpu.vector_store %arg5[%c0_9, %c0_10], %20 {strides = array<i32>} : memref<128x128xf32, #tpu.memory_space<vmem>>, vector<128x128xf32>,
    %c0_i32 = arith.constant 0 : i32
    %22 = arith.cmpi eq, %arg0, %c0_i32 : i32
    %23 = arith.extui %22 : i1 to i32
    %c0_i32_11 = arith.constant 0 : i32
    %24 = arith.cmpi ne, %23, %c0_i32_11 : i32
    scf.if %24 {
      %cst_22 = arith.constant 0.000000e+00 : f32
      %36 = vector.broadcast %cst_22 : f32 to vector<1x128xf32>
      %c0_23 = arith.constant 0 : index
      %c0_24 = arith.constant 0 : index
      %37 = vector.load %arg6[%c0_23, %c0_24] : memref<1x128xf32, #tpu.memory_space<vmem>>, vector<1x128xf32>
      tpu.vector_store %arg6[%c0_23, %c0_24], %36 {strides = array<i32>} : memref<1x128xf32, #tpu.memory_space<vmem>>, vector<1x128xf32>,
      %cst_25 = arith.constant 0.000000e+00 : f32
      %38 = vector.broadcast %cst_25 : f32 to vector<1x128xf32>
      %c0_26 = arith.constant 0 : index
      %c0_27 = arith.constant 0 : index
      %39 = vector.load %arg7[%c0_26, %c0_27] : memref<1x128xf32, #tpu.memory_space<vmem>>, vector<1x128xf32>
      tpu.vector_store %arg7[%c0_26, %c0_27], %38 {strides = array<i32>} : memref<1x128xf32, #tpu.memory_space<vmem>>, vector<1x128xf32>,
    } else {
    }
    %c0_12 = arith.constant 0 : index
    %c0_13 = arith.constant 0 : index
    %25 = vector.load %arg6[%c0_12, %c0_13] : memref<1x128xf32, #tpu.memory_space<vmem>>, vector<1x128xf32>
    %cst_14 = arith.constant dense<0.000000e+00> : vector<128xf32>
    %26 = vector.multi_reduction <add>, %20, %cst_14 [0] : vector<128x128xf32> to vector<128xf32>
    %27 = vector.shape_cast %26 : vector<128xf32> to vector<1x128xf32>
    %28 = arith.addf %25, %27 : vector<1x128xf32>
    %c0_15 = arith.constant 0 : index
    %c0_16 = arith.constant 0 : index
    %29 = vector.load %arg6[%c0_15, %c0_16] : memref<1x128xf32, #tpu.memory_space<vmem>>, vector<1x128xf32>
    tpu.vector_store %arg6[%c0_15, %c0_16], %28 {strides = array<i32>} : memref<1x128xf32, #tpu.memory_space<vmem>>, vector<1x128xf32>,
    %c0_17 = arith.constant 0 : index
    %c0_18 = arith.constant 0 : index
    %30 = vector.load %arg7[%c0_17, %c0_18] : memref<1x128xf32, #tpu.memory_space<vmem>>, vector<1x128xf32>
    %31 = arith.mulf %20, %20 : vector<128x128xf32>
    %cst_19 = arith.constant dense<0.000000e+00> : vector<128xf32>
    %32 = vector.multi_reduction <add>, %31, %cst_19 [0] : vector<128x128xf32> to vector<128xf32>
    %33 = vector.shape_cast %32 : vector<128xf32> to vector<1x128xf32>
    %34 = arith.addf %30, %33 : vector<1x128xf32>
    %c0_20 = arith.constant 0 : index
    %c0_21 = arith.constant 0 : index
    %35 = vector.load %arg7[%c0_20, %c0_21] : memref<1x128xf32, #tpu.memory_space<vmem>>, vector<1x128xf32>
    tpu.vector_store %arg7[%c0_20, %c0_21], %34 {strides = array<i32>} : memref<1x128xf32, #tpu.memory_space<vmem>>, vector<1x128xf32>,
    return
  }
  func.func @transform_0(%arg0: i32) -> (i32, i32) {
    %c0_i32 = arith.constant 0 : i32
    %c0_i32_0 = arith.constant 0 : i32
    return %arg0, %c0_i32 : i32, i32
  }
  func.func @transform_1(%arg0: i32) -> (i32, i32) {
    %c0_i32 = arith.constant 0 : i32
    %c0_i32_0 = arith.constant 0 : i32
    %c0_i32_1 = arith.constant 0 : i32
    return %c0_i32, %c0_i32_0 : i32, i32
  }
  func.func @transform_2(%arg0: i32) -> (i32, i32) {
    %c0_i32 = arith.constant 0 : i32
    %c0_i32_0 = arith.constant 0 : i32
    %c0_i32_1 = arith.constant 0 : i32
    return %c0_i32, %c0_i32_0 : i32, i32
  }
  func.func @transform_3(%arg0: i32) -> (i32, i32) {
    %c0_i32 = arith.constant 0 : i32
    %c0_i32_0 = arith.constant 0 : i32
    %c0_i32_1 = arith.constant 0 : i32
    return %c0_i32, %c0_i32_0 : i32, i32
  }
  func.func @transform_4(%arg0: i32) -> (i32, i32) {
    %c0_i32 = arith.constant 0 : i32
    %c0_i32_0 = arith.constant 0 : i32
    return %arg0, %c0_i32 : i32, i32
  }
  func.func @transform_5(%arg0: i32) -> (i32, i32) {
    %c0_i32 = arith.constant 0 : i32
    %c0_i32_0 = arith.constant 0 : i32
    %c0_i32_1 = arith.constant 0 : i32
    return %c0_i32, %c0_i32_0 : i32, i32
  }
  func.func @transform_6(%arg0: i32) -> (i32, i32) {
    %c0_i32 = arith.constant 0 : i32
    %c0_i32_0 = arith.constant 0 : i32
    %c0_i32_1 = arith.constant 0 : i32
    return %c0_i32, %c0_i32_0 : i32, i32
  }
}

module attributes {stable_mosaic.version = 11 : i64} {
  func.func @_bn_mm_bias_kernel(%arg0: i32, %arg1: memref<128x128xf32, #tpu.memory_space<vmem>>, %arg2: memref<1x128xf32, #tpu.memory_space<vmem>>, %arg3: memref<1x128xf32, #tpu.memory_space<vmem>>, %arg4: memref<128x128xbf16, #tpu.memory_space<vmem>>, %arg5: memref<1x128xf32, #tpu.memory_space<vmem>>, %arg6: memref<128x128xf32, #tpu.memory_space<vmem>>) attributes {dimension_semantics = [#tpu.dimension_semantics<parallel>], iteration_bounds = array<i64: 3>, scalar_prefetch = 0 : i64, scratch_operands = 0 : i64, tpu.core_type = #tpu.core_type<tc>, window_params = [{transform_indices = @transform_0, window_bounds = array<i64: 128, 128>}, {pipeline_mode = #tpu.pipeline_mode<synchronous>, transform_indices = @transform_1, window_bounds = array<i64: 1, 128>}, {pipeline_mode = #tpu.pipeline_mode<synchronous>, transform_indices = @transform_2, window_bounds = array<i64: 1, 128>}, {pipeline_mode = #tpu.pipeline_mode<synchronous>, transform_indices = @transform_3, window_bounds = array<i64: 128, 128>}, {pipeline_mode = #tpu.pipeline_mode<synchronous>, transform_indices = @transform_4, window_bounds = array<i64: 1, 128>}, {transform_indices = @transform_5, window_bounds = array<i64: 128, 128>}]} {
    %c0 = arith.constant 0 : index
    %c0_0 = arith.constant 0 : index
    %0 = vector.load %arg1[%c0, %c0_0] : memref<128x128xf32, #tpu.memory_space<vmem>>, vector<128x128xf32>
    %c0_1 = arith.constant 0 : index
    %c0_2 = arith.constant 0 : index
    %1 = vector.load %arg2[%c0_1, %c0_2] : memref<1x128xf32, #tpu.memory_space<vmem>>, vector<1x128xf32>
    %2 = vector.broadcast %1 : vector<1x128xf32> to vector<128x128xf32>
    %3 = arith.mulf %0, %2 : vector<128x128xf32>
    %c0_3 = arith.constant 0 : index
    %c0_4 = arith.constant 0 : index
    %4 = vector.load %arg3[%c0_3, %c0_4] : memref<1x128xf32, #tpu.memory_space<vmem>>, vector<1x128xf32>
    %5 = vector.broadcast %4 : vector<1x128xf32> to vector<128x128xf32>
    %6 = arith.addf %3, %5 : vector<128x128xf32>
    %cst = arith.constant 0.000000e+00 : f32
    %7 = vector.broadcast %cst : f32 to vector<128x128xf32>
    %8 = arith.maximumf %6, %7 : vector<128x128xf32>
    %9 = arith.truncf %8 : vector<128x128xf32> to vector<128x128xbf16>
    %c0_5 = arith.constant 0 : index
    %c0_6 = arith.constant 0 : index
    %10 = vector.load %arg4[%c0_5, %c0_6] : memref<128x128xbf16, #tpu.memory_space<vmem>>, vector<128x128xbf16>
    %cst_7 = arith.constant dense<0.000000e+00> : vector<128x128xf32>
    %11 = tpu.matmul %9, %10, %cst_7 {dimension_numbers = #tpu.dot_dimension_numbers<[1], [0], [0], [1], [0, 0, 1, 1], [], []>} : vector<128x128xbf16>, vector<128x128xbf16>, vector<128x128xf32> -> vector<128x128xf32>
    %c0_8 = arith.constant 0 : index
    %c0_9 = arith.constant 0 : index
    %12 = vector.load %arg5[%c0_8, %c0_9] : memref<1x128xf32, #tpu.memory_space<vmem>>, vector<1x128xf32>
    %13 = vector.broadcast %12 : vector<1x128xf32> to vector<128x128xf32>
    %14 = arith.addf %11, %13 : vector<128x128xf32>
    %c0_10 = arith.constant 0 : index
    %c0_11 = arith.constant 0 : index
    %15 = vector.load %arg6[%c0_10, %c0_11] : memref<128x128xf32, #tpu.memory_space<vmem>>, vector<128x128xf32>
    tpu.vector_store %arg6[%c0_10, %c0_11], %14 {strides = array<i32>} : memref<128x128xf32, #tpu.memory_space<vmem>>, vector<128x128xf32>,
    return
  }
  func.func @transform_0(%arg0: i32) -> (i32, i32) {
    %c0_i32 = arith.constant 0 : i32
    %c0_i32_0 = arith.constant 0 : i32
    return %arg0, %c0_i32 : i32, i32
  }
  func.func @transform_1(%arg0: i32) -> (i32, i32) {
    %c0_i32 = arith.constant 0 : i32
    %c0_i32_0 = arith.constant 0 : i32
    %c0_i32_1 = arith.constant 0 : i32
    return %c0_i32, %c0_i32_0 : i32, i32
  }
  func.func @transform_2(%arg0: i32) -> (i32, i32) {
    %c0_i32 = arith.constant 0 : i32
    %c0_i32_0 = arith.constant 0 : i32
    %c0_i32_1 = arith.constant 0 : i32
    return %c0_i32, %c0_i32_0 : i32, i32
  }
  func.func @transform_3(%arg0: i32) -> (i32, i32) {
    %c0_i32 = arith.constant 0 : i32
    %c0_i32_0 = arith.constant 0 : i32
    %c0_i32_1 = arith.constant 0 : i32
    return %c0_i32, %c0_i32_0 : i32, i32
  }
  func.func @transform_4(%arg0: i32) -> (i32, i32) {
    %c0_i32 = arith.constant 0 : i32
    %c0_i32_0 = arith.constant 0 : i32
    %c0_i32_1 = arith.constant 0 : i32
    return %c0_i32, %c0_i32_0 : i32, i32
  }
  func.func @transform_5(%arg0: i32) -> (i32, i32) {
    %c0_i32 = arith.constant 0 : i32
    %c0_i32_0 = arith.constant 0 : i32
    return %arg0, %c0_i32 : i32, i32
  }
}

</mosaic_0001>

<bundles_post_ra>
// kernel: decoder_block_forward.3
= control target key start
LH: loop header
LB: loop body
LE: loop exit
PB: predicated region body
PF: predicated region fallthrough
CT: control target
= control target key end

     0   :  { %s727_s15 = smov 0   ;;  %s828_s0 = inlined_call_operand.vmem [shape: bf16[512,128], index: 0, kind: input, shape index: {}]   ;;  %s829_s1 = inlined_call_operand.vmem [shape: bf16[128,128], index: 1, kind: input, shape index: {}]   ;;  %s830_s2 = inlined_call_operand.vmem [shape: f32[512,128], index: 2, kind: output, shape index: {0}]   ;;  %s831_s3 = inlined_call_operand.vmem [shape: f32[1,128], index: 3, kind: output, shape index: {1}]   ;;  %s832_s4 = inlined_call_operand.vmem [shape: f32[1,128], index: 4, kind: output, shape index: {2}]  }
   0x1 LB: > { %s576_s16 = sadd.s32 4294967295, %s699_s15   ;;  %p580_p0 = scmp.ge.s32.totalorder %s699_s15, 1  ;;  %s699_s15 = sphi %s727_s15, %s15_s15  }
   0x2   : > { %p158_p1 = scmp.lt.s32.totalorder %s699_s15, 5 }
   0x4   : > { %p159_p2 = pnand %p580_p0, %p158_p1 }
   0x5   : > { %v677_v0 = vld [vmem:[%s829_s1] sm:$0xff] (!%p159_p2)   ;;  %s581_s19 = sshll.u32 (!%p159_p2), %s576_s16, 4  ;;  %v678_v1 = vld [vmem:[%s829_s1 + $0x8] sm:$0xff] (!%p159_p2)   ;;  %v679_v2 = vld [vmem:[%s829_s1 + $0x10] sm:$0xff] (!%p159_p2)   ;;  %p601_p4 = scmp.ne.s32.totalorder (!%p159_p2), %s576_s16, 0 }
   0x6   : > { %162 = sbr.rel (%p159_p2) target bundleno = 309 (0x135), region = 28  ;;  %p185_p3 = scmp.lt.s32.totalorder (!%p159_p2), %s581_s19, 63  ;;  %620 = vmatprep.subr.bf16.mxu0 (!%p159_p2), %v677_v0  ;;  %652 = vmatprep.subr.bf16.mxu1 (!%p159_p2), %v677_v0  ;;  %v680_v3 = vld [vmem:[%s829_s1 + $0x18] sm:$0xff] (!%p159_p2)   ;;  %v681_v6 = vld [vmem:[%s829_s1 + $0x20] sm:$0xff] (!%p159_p2)   ;;  %v682_v7 = vld [vmem:[%s829_s1 + $0x28] sm:$0xff] (!%p159_p2)  }
   0x7   : > { %621 = vmatpush3.bf16.msra.mxu0 (!%p159_p2), %v677_v0  ;;  %660 = vmatpush3.bf16.msra.mxu1 (!%p159_p2), %v677_v0  ;;  %v683_v8 = vld [vmem:[%s829_s1 + $0x30] sm:$0xff] (!%p159_p2)   ;;  %v684_v9 = vld [vmem:[%s829_s1 + $0x38] sm:$0xff] (!%p159_p2)  }
   0x8   : > { %622 = vmatprep.subr.bf16.mxu0 (!%p159_p2), %v678_v1  ;;  %653 = vmatprep.subr.bf16.mxu1 (!%p159_p2), %v678_v1 }
   0xb   : > { %623 = vmatpush3.bf16.msra.mxu0 (!%p159_p2), %v678_v1  ;;  %661 = vmatpush3.bf16.msra.mxu1 (!%p159_p2), %v678_v1 }
   0xc   : > { %624 = vmatprep.subr.bf16.mxu0 (!%p159_p2), %v679_v2  ;;  %654 = vmatprep.subr.bf16.mxu1 (!%p159_p2), %v679_v2 }
   0xd   : > { %s834_s19 = smov (!%p185_p3, %s581_s19), 63  ;;  %v701_v32 = vmov (!%p601_p4), 0.0  }
   0xe   : > { %s582_s24 = sshll.u32 %s834_s19, 2  ;;  %s584_s12 = sshll.u32 %s834_s19, 3  ;;  %442 = vst [vmem:[%s831_s3] sm:$0x1] (!%p601_p4), %v701_v32  ;;  %443 = vst [vmem:[%s832_s4] sm:$0x1] (!%p601_p4), %v701_v32 }
   0xf   : > { %s752_s27 = scalar_lea.vmem %s828_s0, %s582_s24  ;;  %625 = vmatpush3.bf16.msra.mxu0 %v679_v2  ;;  %662 = vmatpush3.bf16.msra.mxu1 %v679_v2  ;;  %s781_s17 = scalar_lea.vmem %s830_s2, %s584_s12 }
  0x10   : > { %v685_v4 = vld [vmem:[%s752_s27] sm:$0xff]   ;;  %626 = vmatprep.subr.bf16.mxu0 %v680_v3  ;;  %655 = vmatprep.subr.bf16.mxu1 %v680_v3  ;;  %v687_v10 = vld [vmem:[%s752_s27 + $0x8] sm:$0xff]   ;;  %v689_v12 = vld [vmem:[%s752_s27 + $0x10] sm:$0xff]  }
  0x11   : > { %v686_v5 = vld [vmem:[%s752_s27 + $0x20] sm:$0xff]   ;;  %636 = vmatprep.mubr.bf16.mxu0 %v685_v4  ;;  %v688_v11 = vld [vmem:[%s752_s27 + $0x28] sm:$0xff]   ;;  %v690_v13 = vld [vmem:[%s752_s27 + $0x30] sm:$0xff]  }
  0x12   : > { %644 = vmatprep.mubr.bf16.mxu1 %v686_v5  ;;  %v691_v14 = vld [vmem:[%s752_s27 + $0x18] sm:$0xff]  }
  0x13   : > { %627 = vmatpush3.bf16.msra.mxu0 %v680_v3  ;;  %663 = vmatpush3.bf16.msra.mxu1 %v680_v3  ;;  %v692_v15 = vld [vmem:[%s752_s27 + $0x38] sm:$0xff]  }
  0x14   : > { %628 = vmatprep.subr.bf16.mxu0 %v681_v6  ;;  %656 = vmatprep.subr.bf16.mxu1 %v681_v6 }
  0x17   : > { %629 = vmatpush3.bf16.msra.mxu0 %v681_v6  ;;  %664 = vmatpush3.bf16.msra.mxu1 %v681_v6 }
  0x18   : > { %630 = vmatprep.subr.bf16.mxu0 %v682_v7  ;;  %657 = vmatprep.subr.bf16.mxu1 %v682_v7 }
  0x1b   : > { %631 = vmatpush3.bf16.msra.mxu0 %v682_v7  ;;  %665 = vmatpush3.bf16.msra.mxu1 %v682_v7 }
  0x1c   : > { %632 = vmatprep.subr.bf16.mxu0 %v683_v8  ;;  %658 = vmatprep.subr.bf16.mxu1 %v683_v8 }
  0x1f   : > { %633 = vmatpush3.bf16.msra.mxu0 %v683_v8  ;;  %666 = vmatpush3.bf16.msra.mxu1 %v683_v8 }
  0x20   : > { %634 = vmatprep.subr.bf16.mxu0 %v684_v9  ;;  %659 = vmatprep.subr.bf16.mxu1 %v684_v9 }
  0x23   : > { %635 = vmatpush3.bf16.msra.mxu0 %v684_v9  ;;  %667 = vmatpush3.bf16.msra.mxu1 %v684_v9 }
  0x26   : > { %637 = vmatmul.mubr.bf16.vlgmr.msra.gmra.mrb[0].mxu0 %v687_v10  ;;  %645 = vmatmul.mubr.bf16.vlgmr.msra.gmra.mrb[0].mxu1 %v688_v11 }
  0x27   : > { %640 = vmatprep.mubr.bf16.mxu0 %v689_v12  ;;  %648 = vmatprep.mubr.bf16.mxu1 %v690_v13 }
  0x2e   : > { %641 = vmatmul.mubr.bf16.gmra.mrb[4].mxu0 %v691_v14  ;;  %649 = vmatmul.mubr.bf16.gmra.mrb[4].mxu1 %v692_v15 }
  0xf9   : > { %v638_v16 = vpop.f32.mrb[0].mxu0  ;;  %v783_v17 = vpop.f32.mrb[0].mxu1 }
  0xfa   : > { %424 = vst [vmem:[%s781_s17 + $0x10] sm:$0xff] %v638_v16  ;;  %432 = vst [vmem:[%s781_s17 + $0x50] sm:$0xff] %v783_v17  ;;  %v359_v18 = vpop.f32.mrb[1].mxu0  ;;  %v391_v19 = vpop.f32.mrb[1].mxu1 }
  0xfb   : > { %422 = vst [vmem:[%s781_s17] sm:$0xff] %v359_v18  ;;  %430 = vst [vmem:[%s781_s17 + $0x40] sm:$0xff] %v391_v19  ;;  %v639_v20 = vpop.f32.mrb[2].mxu0  ;;  %v647_v21 = vpop.f32.mrb[2].mxu1 }
  0xfc   : > { %425 = vst [vmem:[%s781_s17 + $0x18] sm:$0xff] %v639_v20  ;;  %433 = vst [vmem:[%s781_s17 + $0x58] sm:$0xff] %v647_v21  ;;  %v362_v22 = vpop.f32.mrb[3].mxu0  ;;  %v394_v23 = vpop.f32.mrb[3].mxu1 }
  0xfd   : > { %423 = vst [vmem:[%s781_s17 + $0x8] sm:$0xff] %v362_v22  ;;  %431 = vst [vmem:[%s781_s17 + $0x48] sm:$0xff] %v394_v23 }
  0xff   : > { %441 = sbr.rel (%p601_p4) target bundleno = 262 (0x106), region = 32 }
 0x101   : > { %v642_v24 = vpop.f32.mrb[4].mxu0  ;;  %v650_v25 = vpop.f32.mrb[4].mxu1 }
 0x102   : > { %428 = vst [vmem:[%s781_s17 + $0x30] sm:$0xff] %v642_v24  ;;  %436 = vst [vmem:[%s781_s17 + $0x70] sm:$0xff] %v650_v25  ;;  %v375_v26 = vpop.f32.mrb[5].mxu0  ;;  %v407_v27 = vpop.f32.mrb[5].mxu1 }
 0x103   : > { %426 = vst [vmem:[%s781_s17 + $0x20] sm:$0xff] %v375_v26  ;;  %434 = vst [vmem:[%s781_s17 + $0x60] sm:$0xff] %v407_v27  ;;  %v643_v28 = vpop.f32.mrb[6].mxu0  ;;  %v651_v29 = vpop.f32.mrb[6].mxu1 }
 0x104   : > { %429 = vst [vmem:[%s781_s17 + $0x38] sm:$0xff] %v643_v28  ;;  %437 = vst [vmem:[%s781_s17 + $0x78] sm:$0xff] %v651_v29  ;;  %v378_v30 = vpop.f32.mrb[7].mxu0  ;;  %v410_v31 = vpop.f32.mrb[7].mxu1 }
 0x105   : > { %427 = vst [vmem:[%s781_s17 + $0x28] sm:$0xff] %v378_v30  ;;  %435 = vst [vmem:[%s781_s17 + $0x68] sm:$0xff] %v410_v31 }
 0x106 PF: > { %v445_v33 = vadd.f32 %v362_v22, %v359_v18  ;;  %v469_v34 = vmul.f32 %v359_v18, %v359_v18  ;;  %v470_v35 = vmul.f32 %v362_v22, %v362_v22  ;;  %v471_v37 = vmul.f32 %v638_v16, %v638_v16 }
 0x107   : > { %v472_v39 = vmul.f32 %v639_v20, %v639_v20  ;;  %v473_v42 = vmul.f32 %v375_v26, %v375_v26  ;;  %v474_v45 = vmul.f32 %v378_v30, %v378_v30  ;;  %v475_v48 = vmul.f32 %v642_v24, %v642_v24 }
 0x108   : > { %v446_v36 = vadd.f32 %v638_v16, %v445_v33  ;;  %v485_v40 = vadd.f32 %v470_v35, %v469_v34  ;;  %v476_v51 = vmul.f32 %v643_v28, %v643_v28  ;;  %v477_v54 = vmul.f32 %v391_v19, %v391_v19 }
 0x109   : > { %v478_v57 = vmul.f32 %v394_v23, %v394_v23  ;;  %v479_v60 = vmul.f32 %v783_v17, %v783_v17  ;;  %v480_v63 = vmul.f32 %v647_v21, %v647_v21  ;;  %v481_v2 = vmul.f32 %v407_v27, %v407_v27 }
 0x10a   : > { %v447_v38 = vadd.f32 %v639_v20, %v446_v36  ;;  %v486_v43 = vadd.f32 %v485_v40, %v471_v37  ;;  %v482_v5 = vmul.f32 %v410_v31, %v410_v31  ;;  %v483_v8 = vmul.f32 %v650_v25, %v650_v25 }
 0x10b   : > { %v484_v11 = vmul.f32 %v651_v29, %v651_v29 }
 0x10c   : > { %v448_v41 = vadd.f32 %v447_v38, %v375_v26  ;;  %v487_v46 = vadd.f32 %v486_v43, %v472_v39 }
 0x10e   : > { %v449_v44 = vadd.f32 %v448_v41, %v378_v30  ;;  %v488_v49 = vadd.f32 %v487_v46, %v473_v42 }
 0x110   : > { %v450_v47 = vadd.f32 %v642_v24, %v449_v44  ;;  %v489_v52 = vadd.f32 %v488_v49, %v474_v45 }
 0x112   : > { %v451_v50 = vadd.f32 %v643_v28, %v450_v47  ;;  %v490_v55 = vadd.f32 %v489_v52, %v475_v48  ;;  %v468_v28 = vld [vmem:[%s832_s4] sm:$0x1] }
 0x114   : > { %v452_v53 = vadd.f32 %v451_v50, %v391_v19  ;;  %v491_v58 = vadd.f32 %v490_v55, %v476_v51 }
 0x116   : > { %v453_v56 = vadd.f32 %v452_v53, %v394_v23  ;;  %v492_v61 = vadd.f32 %v491_v58, %v477_v54  ;;  %v444_v23 = vld [vmem:[%s831_s3] sm:$0x1] }
 0x118   : > { %v454_v59 = vadd.f32 %v783_v17, %v453_v56  ;;  %v493_v0 = vadd.f32 %v492_v61, %v478_v57 }
 0x11a   : > { %v455_v62 = vadd.f32 %v647_v21, %v454_v59  ;;  %v494_v3 = vadd.f32 %v493_v0, %v479_v60 }
 0x11c   : > { %v456_v1 = vadd.f32 %v455_v62, %v407_v27  ;;  %v495_v6 = vadd.f32 %v494_v3, %v480_v63 }
 0x11e   : > { %v457_v4 = vadd.f32 %v456_v1, %v410_v31  ;;  %v496_v9 = vadd.f32 %v495_v6, %v481_v2 }
 0x120   : > { %v458_v7 = vadd.f32 %v650_v25, %v457_v4  ;;  %v497_v12 = vadd.f32 %v496_v9, %v482_v5 }
 0x122   : > { %v459_v10 = vadd.f32 %v651_v29, %v458_v7  ;;  %v498_v14 = vadd.f32 %v497_v12, %v483_v8 }
 0x124   : > { %v460_v13 = vrot.slane %v459_v10, 4  ;;  %v499_v16 = vadd.f32 %v498_v14, %v484_v11 }
 0x126   : > { %v461_v15 = vadd.f32 %v460_v13, %v459_v10  ;;  %v500_v18 = vrot.slane %v499_v16, 4 }
 0x128   : > { %v462_v17 = vrot.slane %v461_v15, 2  ;;  %v501_v20 = vadd.f32 %v500_v18, %v499_v16 }
 0x12a   : > { %v463_v19 = vadd.f32 %v462_v17, %v461_v15  ;;  %v502_v22 = vrot.slane %v501_v20, 2 }
 0x12c   : > { %v464_v21 = vrot.slane %v463_v19, 1  ;;  %v503_v25 = vadd.f32 %v502_v22, %v501_v20 }
 0x12e   : > { %v465_v24 = vadd.f32 %v464_v21, %v463_v19  ;;  %v504_v27 = vrot.slane %v503_v25, 1 }
 0x130   : > { %v466_v26 = vadd.f32 %v465_v24, %v444_v23  ;;  %v505_v29 = vadd.f32 %v504_v27, %v503_v25 }
 0x132   : > { %467 = vst [vmem:[%s831_s3] sm:$0x1] %v466_v26  ;;  %v506_v30 = vadd.f32 %v505_v29, %v468_v28 }
 0x134   : > { %507 = vst [vmem:[%s832_s4] sm:$0x1] %v506_v30 }
 0x135 PF: > { %s15_s15 = sadd.s32 1, %s699_s15  }
 0x136   : > { %p12_p5 = scmp.ge.s32.totalorder %s15_s15, 6  }
 0x138   :  { %14 = sbr.rel (!%p12_p5) target bundleno = 1 (0x1), region = 78 }

// kernel: tile.28
= control target key start
LH: loop header
LB: loop body
LE: loop exit
PB: predicated region body
PF: predicated region fallthrough
CT: control target
= control target key end

     0   :  { %s22_s0 = inlined_call_operand.vmem [shape: f32[4], index: 0, kind: input, shape index: {}]   ;;  %s23_s1 = inlined_call_operand.vmem [shape: f32[4,4], index: 1, kind: output, shape index: {}]  }
   0x1   :  { %v4_v0 = vld [vmem:[%s22_s0] ss:$0 sm:$0xff] }
   0x2   :  { %5 = vst [vmem:[%s23_s1] sm:$0xf] %v4_v0 }

// kernel: tile.29
= control target key start
LH: loop header
LB: loop body
LE: loop exit
PB: predicated region body
PF: predicated region fallthrough
CT: control target
= control target key end

     0   :  { %vm7_vm0 = vcmask 31744   ;;  %s37_s8 = smov 4   ;;  %s38_s9 = smov 8   ;;  %vm13_vm1 = vcmask 130144   ;;  %vm19_vm2 = vcmask 97344   ;;  %vm25_vm3 = vcmask 64544   ;;  %s55_s0 = inlined_call_operand.vmem [shape: f32[4,4], index: 0, kind: input, shape index: {}]   ;;  %s56_s1 = inlined_call_operand.vmem [shape: f32[16], index: 1, kind: output, shape index: {}]  }
   0x1   :  { %v4_v0 = vld [vmem:[%s55_s0] sm:$0xf]  ;;  %s36_s0 = smov 12  }
   0x2   :  { %5 = vst [vmem:[#allocation1] sm:$0xf] %v4_v0 }
   0x9   :  { %v10_v1 = vld [vmem:[#allocation1 + $0x3] sm:$0x1]   ;;  %v22_v2 = vld [vmem:[#allocation1 + $0x1] sm:$0x1]   ;;  %v6_v3 = vld [vmem:[#allocation1] sm:$0x1]  }
   0xa   :  { %11 = vrot.lane.b32.xlu0 %v10_v1, %s36_s0  ;;  %23 = vrot.lane.b32.xlu1 %v22_v2, %s37_s8  ;;  %v16_v4 = vld [vmem:[#allocation1 + $0x2] sm:$0x1]   ;;  %8 = vst.msk [vmem:[#allocation0] sm:$0x1] %vm7_vm0, %v6_v3  }
   0xe   :  { %17 = vrot.lane.b32.xlu0 %v16_v4, %s38_s9 }
  0x7c   :  { %v12_v5 = vpop.permute.xlu0 %11   ;;  %v24_v6 = vpop.permute.xlu1 %23  }
  0x7d   :  { %14 = vst.msk [vmem:[#allocation0] sm:$0x1] %vm13_vm1, %v12_v5  }
  0x80   :  { %v18_v7 = vpop.permute.xlu0 %17  }
  0x81   :  { %20 = vst.msk [vmem:[#allocation0] sm:$0x1] %vm19_vm2, %v18_v7  }
  0x82   :  { %26 = vst.msk [vmem:[#allocation0] sm:$0x1] %vm25_vm3, %v24_v6  }
  0x89   :  { %v30_v8 = vld [vmem:[#allocation0] sm:$0x1] }
  0x8a   :  { %32 = vst [vmem:[%s56_s1] sm:$0x1] %v30_v8 }

// kernel: decoder_block_forward.4
= control target key start
LH: loop header
LB: loop body
LE: loop exit
PB: predicated region body
PF: predicated region fallthrough
CT: control target
= control target key end

     0   :  { %s922_s21 = smov 0   ;;  %s1126_s0 = inlined_call_operand.vmem [shape: bf16[384,128], index: 0, kind: input, shape index: {}]   ;;  %s1127_s1 = inlined_call_operand.vmem [shape: f32[1,128], index: 1, kind: input, shape index: {}]   ;;  %s1128_s2 = inlined_call_operand.vmem [shape: f32[1,128], index: 2, kind: input, shape index: {}]   ;;  %s1129_s3 = inlined_call_operand.vmem [shape: bf16[128,128], index: 3, kind: input, shape index: {}]   ;;  %s1130_s4 = inlined_call_operand.vmem [shape: f32[384,128], index: 4, kind: output, shape index: {0}]   ;;  %s1131_s5 = inlined_call_operand.vmem [shape: f32[1,128], index: 5, kind: output, shape index: {1}]   ;;  %s1132_s6 = inlined_call_operand.vmem [shape: f32[1,128], index: 6, kind: output, shape index: {2}]  }
   0x1 LB: > { %s928_s22 = sadd.s32 4294967295, %s884_s21   ;;  %p739_p0 = scmp.ge.s32.totalorder %s884_s21, 1  ;;  %s884_s21 = sphi %s922_s21, %s17_s21  }
   0x2   : > { %p208_p1 = scmp.lt.s32.totalorder %s884_s21, 4 }
   0x4   : > { %p209_p2 = pnand %p739_p0, %p208_p1 }
   0x5   : > { %v870_v0 = vld [vmem:[%s1129_s3] sm:$0xff] (!%p209_p2)   ;;  %s740_s25 = sshll.u32 (!%p209_p2), %s928_s22, 4  ;;  %v871_v1 = vld [vmem:[%s1129_s3 + $0x8] sm:$0xff] (!%p209_p2)   ;;  %v872_v2 = vld [vmem:[%s1129_s3 + $0x10] sm:$0xff] (!%p209_p2)   ;;  %s754_s27 = sshll.u32 (!%p209_p2), %s928_s22, 7 }
   0x6   : > { %212 = sbr.rel (%p209_p2) target bundleno = 311 (0x137), region = 36  ;;  %p239_p3 = scmp.lt.s32.totalorder (!%p209_p2), %s740_s25, 47  ;;  %813 = vmatprep.subr.bf16.mxu0 (!%p209_p2), %v870_v0  ;;  %845 = vmatprep.subr.bf16.mxu1 (!%p209_p2), %v870_v0  ;;  %v873_v3 = vld [vmem:[%s1129_s3 + $0x18] sm:$0xff] (!%p209_p2)   ;;  %v957_v5 = vld [vmem:[%s1127_s1] ss:$0 sm:$0xff] (!%p209_p2)  ;;  %v875_v32 = vld [vmem:[%s1129_s3 + $0x28] sm:$0xff] (!%p209_p2)  }
   0x7   : > { %814 = vmatpush3.bf16.msra.mxu0 (!%p209_p2), %v870_v0  ;;  %853 = vmatpush3.bf16.msra.mxu1 (!%p209_p2), %v870_v0  ;;  %v964_v10 = vld [vmem:[%s1128_s2] ss:$0 sm:$0xff] (!%p209_p2)  ;;  %v876_v48 = vld [vmem:[%s1129_s3 + $0x30] sm:$0xff] (!%p209_p2)   ;;  %v877_v63 = vld [vmem:[%s1129_s3 + $0x38] sm:$0xff] (!%p209_p2)   ;;  %p755_p4 = scmp.ne.s32.totalorder (!%p209_p2), %s928_s22, 0 }
   0x8   : > { %815 = vmatprep.subr.bf16.mxu0 (!%p209_p2), %v871_v1  ;;  %846 = vmatprep.subr.bf16.mxu1 (!%p209_p2), %v871_v1  ;;  %v874_v17 = vld [vmem:[%s1129_s3 + $0x20] sm:$0xff] (!%p209_p2)  }
   0xb   : > { %816 = vmatpush3.bf16.msra.mxu0 (!%p209_p2), %v871_v1  ;;  %854 = vmatpush3.bf16.msra.mxu1 (!%p209_p2), %v871_v1 }
   0xc   : > { %817 = vmatprep.subr.bf16.mxu0 (!%p209_p2), %v872_v2  ;;  %847 = vmatprep.subr.bf16.mxu1 (!%p209_p2), %v872_v2 }
   0xd   : > { %s1134_s25 = smov (!%p239_p3, %s740_s25), 47 }
   0xe   : > { %s741_s30 = sshll.u32 %s1134_s25, 2  ;;  %s743_s28 = sshll.u32 %s1134_s25, 3 }
   0xf   : > { %s948_s9 = scalar_lea.vmem %s1126_s0, %s741_s30  ;;  %818 = vmatpush3.bf16.msra.mxu0 %v872_v2  ;;  %855 = vmatpush3.bf16.msra.mxu1 %v872_v2  ;;  %s1030_s7 = scalar_lea.vmem %s1130_s4, %s743_s28 }
  0x10   : > { %v759_v4 = vld [vmem:[%s948_s9] sm:$0xff]   ;;  %v790_v9 = vld [vmem:[%s948_s9 + $0x8] sm:$0xff]   ;;  %v791_v16 = vld [vmem:[%s948_s9 + $0x10] sm:$0xff]   ;;  %819 = vmatprep.subr.bf16.mxu0 %v873_v3  ;;  %848 = vmatprep.subr.bf16.mxu1 %v873_v3 }
  0x11   : > { %v760_v6 = vunpack.c.l.bf16 %v759_v4  ;;  %v761_v7 = vunpack.c.h.bf16 %v759_v4  ;;  %v793_v8 = vld [vmem:[%s948_s9 + $0x20] sm:$0xff]   ;;  %v794_v13 = vld [vmem:[%s948_s9 + $0x28] sm:$0xff]   ;;  %v764_v20 = vunpack.c.l.bf16 %v790_v9  ;;  %v765_v21 = vunpack.c.h.bf16 %v790_v9  ;;  %v795_v31 = vld [vmem:[%s948_s9 + $0x30] sm:$0xff]  }
  0x12   : > { %v776_v11 = vunpack.c.l.bf16 %v793_v8  ;;  %v777_v12 = vunpack.c.h.bf16 %v793_v8  ;;  %v780_v24 = vunpack.c.l.bf16 %v794_v13  ;;  %v781_v25 = vunpack.c.h.bf16 %v794_v13  ;;  %v792_v44 = vld [vmem:[%s948_s9 + $0x18] sm:$0xff]  }
  0x13   : > { %v290_v14 = vmul.f32 %v760_v6, %v957_v5  ;;  %v291_v15 = vmul.f32 %v761_v7, %v957_v5  ;;  %v768_v28 = vunpack.c.l.bf16 %v791_v16  ;;  %820 = vmatpush3.bf16.msra.mxu0 %v873_v3  ;;  %856 = vmatpush3.bf16.msra.mxu1 %v873_v3  ;;  %v292_v35 = vmul.f32 %v764_v20, %v957_v5  ;;  %v796_v47 = vld [vmem:[%s948_s9 + $0x38] sm:$0xff]  }
  0x14   : > { %v298_v18 = vmul.f32 %v776_v11, %v957_v5  ;;  %v299_v19 = vmul.f32 %v777_v12, %v957_v5  ;;  %821 = vmatprep.subr.bf16.mxu0 %v874_v17  ;;  %849 = vmatprep.subr.bf16.mxu1 %v874_v17  ;;  %v293_v36 = vmul.f32 %v765_v21, %v957_v5  ;;  %v769_v40 = vunpack.c.h.bf16 %v791_v16 }
  0x15   : > { %v313_v22 = vadd.f32 %v964_v10, %v290_v14  ;;  %v314_v23 = vadd.f32 %v964_v10, %v291_v15  ;;  %v300_v38 = vmul.f32 %v780_v24, %v957_v5  ;;  %v301_v39 = vmul.f32 %v781_v25, %v957_v5 }
  0x16   : > { %v321_v26 = vadd.f32 %v964_v10, %v298_v18  ;;  %v322_v27 = vadd.f32 %v964_v10, %v299_v19  ;;  %v294_v42 = vmul.f32 %v768_v28, %v957_v5  ;;  %v784_v43 = vunpack.c.l.bf16 %v795_v31 }
  0x17   : > { %v329_v29 = vmax.f32 %v313_v22, 0.0  ;;  %v330_v30 = vmax.f32 %v314_v23, 0.0  ;;  %822 = vmatpush3.bf16.msra.mxu0 %v874_v17  ;;  %857 = vmatpush3.bf16.msra.mxu1 %v874_v17  ;;  %v295_v45 = vmul.f32 %v769_v40, %v957_v5  ;;  %v785_v46 = vunpack.c.h.bf16 %v795_v31 }
  0x18   : > { %v337_v33 = vmax.f32 %v321_v26, 0.0  ;;  %v338_v34 = vmax.f32 %v322_v27, 0.0  ;;  %823 = vmatprep.subr.bf16.mxu0 %v875_v32  ;;  %850 = vmatprep.subr.bf16.mxu1 %v875_v32  ;;  %v315_v49 = vadd.f32 %v964_v10, %v292_v35  ;;  %v316_v50 = vadd.f32 %v964_v10, %v293_v36 }
  0x19   : > { %v345_v37 = vpack.c.bf16 %v330_v30, %v329_v29  ;;  %v302_v51 = vmul.f32 %v784_v43, %v957_v5  ;;  %v323_v52 = vadd.f32 %v964_v10, %v300_v38  ;;  %v324_v53 = vadd.f32 %v964_v10, %v301_v39 }
  0x1a   : > { %v349_v41 = vpack.c.bf16 %v338_v34, %v337_v33  ;;  %v303_v54 = vmul.f32 %v785_v46, %v957_v5  ;;  %v772_v55 = vunpack.c.l.bf16 %v792_v44  ;;  %v317_v56 = vadd.f32 %v964_v10, %v294_v42 }
  0x1b   : > { %829 = vmatprep.mubr.bf16.mxu0 %v345_v37  ;;  %v773_v57 = vunpack.c.h.bf16 %v792_v44  ;;  %v788_v58 = vunpack.c.l.bf16 %v796_v47  ;;  %v789_v59 = vunpack.c.h.bf16 %v796_v47  ;;  %824 = vmatpush3.bf16.msra.mxu0 %v875_v32  ;;  %v318_v60 = vadd.f32 %v964_v10, %v295_v45 }
  0x1c   : > { %837 = vmatprep.mubr.bf16.mxu1 %v349_v41  ;;  %858 = vmatpush3.bf16.msra.mxu1 %v875_v32  ;;  %v325_v61 = vadd.f32 %v964_v10, %v302_v51  ;;  %v326_v62 = vadd.f32 %v964_v10, %v303_v54  ;;  %v331_v0 = vmax.f32 %v315_v49, 0.0  ;;  %v332_v1 = vmax.f32 %v316_v50, 0.0 }
  0x1d   : > { %825 = vmatprep.subr.bf16.mxu0 %v876_v48  ;;  %851 = vmatprep.subr.bf16.mxu1 %v876_v48  ;;  %v339_v2 = vmax.f32 %v323_v52, 0.0  ;;  %v340_v3 = vmax.f32 %v324_v53, 0.0  ;;  %v296_v4 = vmul.f32 %v772_v55, %v957_v5  ;;  %v297_v6 = vmul.f32 %v773_v57, %v957_v5 }
  0x1e   : > { %v304_v7 = vmul.f32 %v788_v58, %v957_v5  ;;  %v305_v8 = vmul.f32 %v789_v59, %v957_v5  ;;  %v333_v9 = vmax.f32 %v317_v56, 0.0  ;;  %v334_v11 = vmax.f32 %v318_v60, 0.0 }
  0x1f   : > { %826 = vmatpush3.bf16.msra.mxu0 %v876_v48  ;;  %v341_v12 = vmax.f32 %v325_v61, 0.0  ;;  %v342_v13 = vmax.f32 %v326_v62, 0.0  ;;  %v346_v14 = vpack.c.bf16 %v332_v1, %v331_v0  ;;  %v350_v15 = vpack.c.bf16 %v340_v3, %v339_v2 }
  0x20   : > { %859 = vmatpush3.bf16.msra.mxu1 %v876_v48  ;;  %827 = vmatprep.subr.bf16.mxu0 %v877_v63  ;;  %v319_v16 = vadd.f32 %v964_v10, %v296_v4  ;;  %v320_v17 = vadd.f32 %v964_v10, %v297_v6  ;;  %v327_v18 = vadd.f32 %v964_v10, %v304_v7  ;;  %v514_v27 = vlaneseq }
  0x21   : > { %852 = vmatprep.subr.bf16.mxu1 %v877_v63  ;;  %v328_v19 = vadd.f32 %v964_v10, %v305_v8  ;;  %v347_v5 = vpack.c.bf16 %v334_v11, %v333_v9  ;;  %v351_v20 = vpack.c.bf16 %v342_v13, %v341_v12  ;;  %v1016_v30 = vstv %s754_s27 }
  0x22   : > { %v335_v21 = vmax.f32 %v319_v16, 0.0  ;;  %v336_v22 = vmax.f32 %v320_v17, 0.0  ;;  %v343_v23 = vmax.f32 %v327_v18, 0.0  ;;  %v515_v28 = vshrl.u32 %v514_v27, 7 }
  0x23   : > { %828 = vmatpush3.bf16.msra.mxu0 %v877_v63  ;;  %v344_v24 = vmax.f32 %v328_v19, 0.0 }
  0x24   : > { %860 = vmatpush3.bf16.msra.mxu1 %v877_v63  ;;  %v348_v25 = vpack.c.bf16 %v336_v22, %v335_v21  ;;  %v517_v10 = vadd.s32 16, %v515_v28  ;;  %v525_v29 = vadd.s32 80, %v515_v28  ;;  %v523_v31 = vadd.s32 64, %v515_v28 }
  0x25   : > { %v352_v26 = vpack.c.bf16 %v344_v24, %v343_v23  ;;  %v518_v32 = vadd.s32 24, %v515_v28  ;;  %v526_v33 = vadd.s32 88, %v515_v28  ;;  %v516_v34 = vadd.s32 8, %v515_v28 }
  0x26   : > { %830 = vmatmul.mubr.bf16.vlgmr.msra.gmra.mrb[0].mxu0 %v346_v14  ;;  %v524_v35 = vadd.s32 72, %v515_v28  ;;  %v535_v36 = vadd.s32 %v1016_v30, %v517_v10  ;;  %v543_v37 = vadd.s32 %v1016_v30, %v525_v29  ;;  %v533_v38 = vadd.s32 %v1016_v30, %v515_v28 }
  0x27   : > { %838 = vmatmul.mubr.bf16.vlgmr.msra.gmra.mrb[0].mxu1 %v350_v15  ;;  %833 = vmatprep.mubr.bf16.mxu0 %v347_v5  ;;  %v541_v39 = vadd.s32 %v1016_v30, %v523_v31  ;;  %v536_v40 = vadd.s32 %v1016_v30, %v518_v32  ;;  %v544_v41 = vadd.s32 %v1016_v30, %v526_v33  ;;  %v521_v44 = vadd.s32 48, %v515_v28 }
  0x28   : > { %841 = vmatprep.mubr.bf16.mxu1 %v351_v20  ;;  %v534_v42 = vadd.s32 %v1016_v30, %v516_v34  ;;  %v542_v43 = vadd.s32 %v1016_v30, %v524_v35  ;;  %vm551_vm0 = vcmp.lt.s32.totalorder %v535_v36, 288  ;;  %vm559_vm1 = vcmp.lt.s32.totalorder %v543_v37, 288 }
  0x29   : > { %vm549_vm2 = vcmp.lt.s32.totalorder %v533_v38, 288  ;;  %vm557_vm3 = vcmp.lt.s32.totalorder %v541_v39, 288  ;;  %v529_v45 = vadd.s32 112, %v515_v28  ;;  %vm552_vm4 = vcmp.lt.s32.totalorder %v536_v40, 288 }
  0x2a   : > { %vm560_vm5 = vcmp.lt.s32.totalorder %v544_v41, 288  ;;  %v519_v46 = vadd.s32 32, %v515_v28  ;;  %v527_v47 = vadd.s32 96, %v515_v28  ;;  %vm550_vm6 = vcmp.lt.s32.totalorder %v534_v42, 288 }
  0x2b   : > { %vm558_vm7 = vcmp.lt.s32.totalorder %v542_v43, 288  ;;  %v522_v50 = vadd.s32 56, %v515_v28  ;;  %v530_v51 = vadd.s32 120, %v515_v28  ;;  %v520_v56 = vadd.s32 40, %v515_v28 }
  0x2c   : > { %v528_v57 = vadd.s32 104, %v515_v28  ;;  %v539_v62 = vadd.s32 %v1016_v30, %v521_v44  ;;  %v547_v63 = vadd.s32 %v1016_v30, %v529_v45  ;;  %v537_v4 = vadd.s32 %v1016_v30, %v519_v46 }
  0x2d   : > { %v545_v6 = vadd.s32 %v1016_v30, %v527_v47  ;;  %v540_v9 = vadd.s32 %v1016_v30, %v522_v50  ;;  %v548_v11 = vadd.s32 %v1016_v30, %v530_v51  ;;  %v538_v12 = vadd.s32 %v1016_v30, %v520_v56 }
  0x2e   : > { %834 = vmatmul.mubr.bf16.gmra.mrb[4].mxu0 %v348_v25  ;;  %v546_v13 = vadd.s32 %v1016_v30, %v528_v57  ;;  %vm555_vm8 = vcmp.lt.s32.totalorder %v539_v62, 288  ;;  %vm563_vm9 = vcmp.lt.s32.totalorder %v547_v63, 288  ;;  %vm553_vm10 = vcmp.lt.s32.totalorder %v537_v4, 288 }
  0x2f   : > { %842 = vmatmul.mubr.bf16.gmra.mrb[4].mxu1 %v352_v26  ;;  %vm561_vm11 = vcmp.lt.s32.totalorder %v545_v6, 288  ;;  %vm556_vm12 = vcmp.lt.s32.totalorder %v540_v9, 288  ;;  %vm564_vm13 = vcmp.lt.s32.totalorder %v548_v11, 288  ;;  %vm554_vm14 = vcmp.lt.s32.totalorder %v538_v12, 288 }
  0x30   : > { %vm562_vm15 = vcmp.lt.s32.totalorder %v546_v13, 288  ;;  %v886_v10 = vmov (!%p755_p4), 0.0  }
  0x31   : > { %601 = vst [vmem:[%s1131_s5] sm:$0x1] (!%p755_p4), %v886_v10  ;;  %602 = vst [vmem:[%s1132_s6] sm:$0x1] (!%p755_p4), %v886_v10 }
  0xf9   : > { %v831_v48 = vpop.f32.mrb[0].mxu0 }
  0xfa   : > { %v839_v49 = vpop.f32.mrb[0].mxu1  ;;  %v1033_v52 = vsel %vm551_vm0, %v831_v48, 0.0  ;;  %v451_v54 = vpop.f32.mrb[1].mxu0 }
  0xfb   : > { %v1036_v53 = vsel %vm559_vm1, %v839_v49, 0.0  ;;  %v483_v55 = vpop.f32.mrb[1].mxu1  ;;  %583 = vst [vmem:[%s1030_s7 + $0x10] sm:$0xff] %v1033_v52  ;;  %v565_v58 = vsel %vm549_vm2, %v451_v54, 0.0  ;;  %v832_v60 = vpop.f32.mrb[2].mxu0 }
  0xfc   : > { %591 = vst [vmem:[%s1030_s7 + $0x50] sm:$0xff] %v1036_v53  ;;  %v1044_v59 = vsel %vm557_vm3, %v483_v55, 0.0  ;;  %v840_v61 = vpop.f32.mrb[2].mxu1  ;;  %581 = vst [vmem:[%s1030_s7] sm:$0xff] %v565_v58  ;;  %v568_v0 = vsel %vm552_vm4, %v832_v60, 0.0  ;;  %v454_v2 = vpop.f32.mrb[3].mxu0 }
  0xfd   : > { %589 = vst [vmem:[%s1030_s7 + $0x40] sm:$0xff] %v1044_v59  ;;  %v1053_v1 = vsel %vm560_vm5, %v840_v61, 0.0  ;;  %v486_v3 = vpop.f32.mrb[3].mxu1  ;;  %584 = vst [vmem:[%s1030_s7 + $0x18] sm:$0xff] %v568_v0  ;;  %v566_v7 = vsel %vm550_vm6, %v454_v2, 0.0 }
  0xfe   : > { %592 = vst [vmem:[%s1030_s7 + $0x58] sm:$0xff] %v1053_v1  ;;  %v1062_v8 = vsel %vm558_vm7, %v486_v3, 0.0  ;;  %582 = vst [vmem:[%s1030_s7 + $0x8] sm:$0xff] %v566_v7 }
  0xff   : > { %590 = vst [vmem:[%s1030_s7 + $0x48] sm:$0xff] %v1062_v8 }
 0x101   : > { %v835_v14 = vpop.f32.mrb[4].mxu0  ;;  %600 = sbr.rel (%p755_p4) target bundleno = 264 (0x108), region = 40 }
 0x102   : > { %v843_v15 = vpop.f32.mrb[4].mxu1  ;;  %v571_v16 = vsel %vm555_vm8, %v835_v14, 0.0  ;;  %v467_v18 = vpop.f32.mrb[5].mxu0 }
 0x103   : > { %v1071_v17 = vsel %vm563_vm9, %v843_v15, 0.0  ;;  %v499_v19 = vpop.f32.mrb[5].mxu1  ;;  %587 = vst [vmem:[%s1030_s7 + $0x30] sm:$0xff] %v571_v16  ;;  %v569_v5 = vsel %vm553_vm10, %v467_v18, 0.0  ;;  %v836_v21 = vpop.f32.mrb[6].mxu0 }
 0x104   : > { %595 = vst [vmem:[%s1030_s7 + $0x70] sm:$0xff] %v1071_v17  ;;  %v577_v20 = vsel %vm561_vm11, %v499_v19, 0.0  ;;  %v844_v22 = vpop.f32.mrb[6].mxu1  ;;  %585 = vst [vmem:[%s1030_s7 + $0x20] sm:$0xff] %v569_v5  ;;  %v572_v23 = vsel %vm556_vm12, %v836_v21, 0.0  ;;  %v470_v25 = vpop.f32.mrb[7].mxu0 }
 0x105   : > { %593 = vst [vmem:[%s1030_s7 + $0x60] sm:$0xff] %v577_v20  ;;  %v580_v24 = vsel %vm564_vm13, %v844_v22, 0.0  ;;  %v502_v26 = vpop.f32.mrb[7].mxu1  ;;  %588 = vst [vmem:[%s1030_s7 + $0x38] sm:$0xff] %v572_v23  ;;  %v570_v27 = vsel %vm554_vm14, %v470_v25, 0.0 }
 0x106   : > { %596 = vst [vmem:[%s1030_s7 + $0x78] sm:$0xff] %v580_v24  ;;  %v578_v28 = vsel %vm562_vm15, %v502_v26, 0.0  ;;  %586 = vst [vmem:[%s1030_s7 + $0x28] sm:$0xff] %v570_v27 }
 0x107   : > { %594 = vst [vmem:[%s1030_s7 + $0x68] sm:$0xff] %v578_v28 }
 0x108 PF: > { %v604_v29 = vadd.f32 %v566_v7, %v565_v58  ;;  %v628_v30 = vmul.f32 %v565_v58, %v565_v58  ;;  %v629_v31 = vmul.f32 %v566_v7, %v566_v7  ;;  %v630_v33 = vmul.f32 %v1033_v52, %v1033_v52  ;;  %v603_v21 = vld [vmem:[%s1131_s5] sm:$0x1] }
 0x109   : > { %v631_v35 = vmul.f32 %v568_v0, %v568_v0  ;;  %v632_v38 = vmul.f32 %v569_v5, %v569_v5  ;;  %v633_v41 = vmul.f32 %v570_v27, %v570_v27  ;;  %v634_v44 = vmul.f32 %v571_v16, %v571_v16 }
 0x10a   : > { %v605_v32 = vadd.f32 %v604_v29, %v1033_v52  ;;  %v644_v36 = vadd.f32 %v629_v31, %v628_v30  ;;  %v635_v47 = vmul.f32 %v572_v23, %v572_v23  ;;  %v636_v50 = vmul.f32 %v1044_v59, %v1044_v59 }
 0x10b   : > { %v637_v54 = vmul.f32 %v1062_v8, %v1062_v8  ;;  %v638_v57 = vmul.f32 %v1036_v53, %v1036_v53  ;;  %v639_v61 = vmul.f32 %v1053_v1, %v1053_v1  ;;  %v640_v63 = vmul.f32 %v577_v20, %v577_v20 }
 0x10c   : > { %v606_v34 = vadd.f32 %v605_v32, %v568_v0  ;;  %v645_v39 = vadd.f32 %v644_v36, %v630_v33  ;;  %v641_v3 = vmul.f32 %v578_v28, %v578_v28  ;;  %v642_v7 = vmul.f32 %v1071_v17, %v1071_v17 }
 0x10d   : > { %v643_v9 = vmul.f32 %v580_v24, %v580_v24 }
 0x10e   : > { %v607_v37 = vadd.f32 %v606_v34, %v569_v5  ;;  %v646_v42 = vadd.f32 %v645_v39, %v631_v35 }
 0x110   : > { %v608_v40 = vadd.f32 %v607_v37, %v570_v27  ;;  %v647_v45 = vadd.f32 %v646_v42, %v632_v38 }
 0x112   : > { %v609_v43 = vadd.f32 %v608_v40, %v571_v16  ;;  %v648_v48 = vadd.f32 %v647_v45, %v633_v41 }
 0x114   : > { %v610_v46 = vadd.f32 %v609_v43, %v572_v23  ;;  %v649_v51 = vadd.f32 %v648_v48, %v634_v44 }
 0x116   : > { %v611_v49 = vadd.f32 %v610_v46, %v1044_v59  ;;  %v650_v55 = vadd.f32 %v649_v51, %v635_v47 }
 0x118   : > { %v612_v52 = vadd.f32 %v611_v49, %v1062_v8  ;;  %v651_v58 = vadd.f32 %v650_v55, %v636_v50 }
 0x11a   : > { %v613_v56 = vadd.f32 %v612_v52, %v1036_v53  ;;  %v652_v62 = vadd.f32 %v651_v58, %v637_v54 }
 0x11c   : > { %v614_v60 = vadd.f32 %v613_v56, %v1053_v1  ;;  %v653_v0 = vadd.f32 %v652_v62, %v638_v57 }
 0x11e   : > { %v615_v59 = vadd.f32 %v614_v60, %v577_v20  ;;  %v654_v4 = vadd.f32 %v653_v0, %v639_v61 }
 0x120   : > { %v616_v2 = vadd.f32 %v615_v59, %v578_v28  ;;  %v655_v8 = vadd.f32 %v654_v4, %v640_v63 }
 0x122   : > { %v617_v6 = vadd.f32 %v616_v2, %v1071_v17  ;;  %v656_v11 = vadd.f32 %v655_v8, %v641_v3 }
 0x124   : > { %v618_v53 = vadd.f32 %v617_v6, %v580_v24  ;;  %v657_v13 = vadd.f32 %v656_v11, %v642_v7  ;;  %v627_v24 = vld [vmem:[%s1132_s6] sm:$0x1] }
 0x126   : > { %v619_v12 = vrot.slane %v618_v53, 4  ;;  %v658_v1 = vadd.f32 %v657_v13, %v643_v9 }
 0x128   : > { %v620_v14 = vadd.f32 %v619_v12, %v618_v53  ;;  %v659_v16 = vrot.slane %v658_v1, 4 }
 0x12a   : > { %v621_v15 = vrot.slane %v620_v14, 2  ;;  %v660_v19 = vadd.f32 %v659_v16, %v658_v1 }
 0x12c   : > { %v622_v18 = vadd.f32 %v621_v15, %v620_v14  ;;  %v661_v20 = vrot.slane %v660_v19, 2 }
 0x12e   : > { %v623_v5 = vrot.slane %v622_v18, 1  ;;  %v662_v17 = vadd.f32 %v661_v20, %v660_v19 }
 0x130   : > { %v624_v22 = vadd.f32 %v623_v5, %v622_v18  ;;  %v663_v25 = vrot.slane %v662_v17, 1 }
 0x132   : > { %v625_v23 = vadd.f32 %v624_v22, %v603_v21  ;;  %v664_v26 = vadd.f32 %v663_v25, %v662_v17 }
 0x134   : > { %626 = vst [vmem:[%s1131_s5] sm:$0x1] %v625_v23  ;;  %v665_v27 = vadd.f32 %v664_v26, %v627_v24 }
 0x136   : > { %666 = vst [vmem:[%s1132_s6] sm:$0x1] %v665_v27 }
 0x137 PF: > { %s17_s21 = sadd.s32 1, %s884_s21  }
 0x138   : > { %p14_p5 = scmp.ge.s32.totalorder %s17_s21, 5  }
 0x13a   :  { %16 = sbr.rel (!%p14_p5) target bundleno = 1 (0x1), region = 86 }

// kernel: decoder_block_forward.5
= control target key start
LH: loop header
LB: loop body
LE: loop exit
PB: predicated region body
PF: predicated region fallthrough
CT: control target
= control target key end

     0   :  { %s695_s18 = smov 0   ;;  %s824_s0 = inlined_call_operand.vmem [shape: f32[384,128], index: 0, kind: input, shape index: {}]   ;;  %s825_s1 = inlined_call_operand.vmem [shape: f32[1,128], index: 1, kind: input, shape index: {}]   ;;  %s826_s2 = inlined_call_operand.vmem [shape: f32[1,128], index: 2, kind: input, shape index: {}]   ;;  %s827_s3 = inlined_call_operand.vmem [shape: bf16[128,128], index: 3, kind: input, shape index: {}]   ;;  %s828_s4 = inlined_call_operand.vmem [shape: f32[1,128], index: 4, kind: input, shape index: {}]   ;;  %s829_s5 = inlined_call_operand.vmem [shape: f32[384,128], index: 5, kind: output, shape index: {}]  }
   0x1 LB: > { %s555_s19 = sadd.s32 4294967295, %s663_s18   ;;  %p559_p0 = scmp.ge.s32.totalorder %s663_s18, 1  ;;  %s663_s18 = sphi %s695_s18, %s15_s18  }
   0x2   : > { %p188_p1 = scmp.lt.s32.totalorder %s663_s18, 4 }
   0x4   : > { %p189_p2 = pnand %p559_p0, %p188_p1 }
   0x5   : > { %v649_v0 = vld [vmem:[%s827_s3] sm:$0xff] (!%p189_p2)   ;;  %s560_s22 = sshll.u32 (!%p189_p2), %s555_s19, 4  ;;  %v650_v1 = vld [vmem:[%s827_s3 + $0x8] sm:$0xff] (!%p189_p2)   ;;  %v651_v2 = vld [vmem:[%s827_s3 + $0x10] sm:$0xff] (!%p189_p2)  }
   0x6   : > { %192 = sbr.rel (%p189_p2) target bundleno = 264 (0x108), region = 40  ;;  %p217_p3 = scmp.lt.s32.totalorder (!%p189_p2), %s560_s22, 47  ;;  %593 = vmatprep.subr.bf16.mxu0 (!%p189_p2), %v649_v0  ;;  %625 = vmatprep.subr.bf16.mxu1 (!%p189_p2), %v649_v0  ;;  %v652_v3 = vld [vmem:[%s827_s3 + $0x18] sm:$0xff] (!%p189_p2)   ;;  %v730_v6 = vld [vmem:[%s825_s1] ss:$0 sm:$0xff] (!%p189_p2)  ;;  %v654_v27 = vld [vmem:[%s827_s3 + $0x28] sm:$0xff] (!%p189_p2)  }
   0x7   : > { %594 = vmatpush3.bf16.msra.mxu0 (!%p189_p2), %v649_v0  ;;  %633 = vmatpush3.bf16.msra.mxu1 (!%p189_p2), %v649_v0  ;;  %v737_v9 = vld [vmem:[%s826_s2] ss:$0 sm:$0xff] (!%p189_p2)  ;;  %v655_v42 = vld [vmem:[%s827_s3 + $0x30] sm:$0xff] (!%p189_p2)   ;;  %v656_v55 = vld [vmem:[%s827_s3 + $0x38] sm:$0xff] (!%p189_p2)  }
   0x8   : > { %595 = vmatprep.subr.bf16.mxu0 (!%p189_p2), %v650_v1  ;;  %626 = vmatprep.subr.bf16.mxu1 (!%p189_p2), %v650_v1  ;;  %v653_v16 = vld [vmem:[%s827_s3 + $0x20] sm:$0xff] (!%p189_p2)  }
   0xb   : > { %596 = vmatpush3.bf16.msra.mxu0 (!%p189_p2), %v650_v1  ;;  %634 = vmatpush3.bf16.msra.mxu1 (!%p189_p2), %v650_v1 }
   0xc   : > { %597 = vmatprep.subr.bf16.mxu0 (!%p189_p2), %v651_v2  ;;  %627 = vmatprep.subr.bf16.mxu1 (!%p189_p2), %v651_v2 }
   0xd   : > { %s831_s22 = smov (!%p217_p3, %s560_s22), 47 }
   0xe   : > { %s561_s27 = sshll.u32 %s831_s22, 3 }
   0xf   : > { %s720_s30 = scalar_lea.vmem %s824_s0, %s561_s27  ;;  %598 = vmatpush3.bf16.msra.mxu0 %v651_v2  ;;  %635 = vmatpush3.bf16.msra.mxu1 %v651_v2  ;;  %s803_s26 = scalar_lea.vmem %s829_s5, %s561_s27 }
  0x10   : > { %v229_v4 = vld [vmem:[%s720_s30] sm:$0xff]  ;;  %v230_v5 = vld [vmem:[%s720_s30 + $0x8] sm:$0xff]  ;;  %599 = vmatprep.subr.bf16.mxu0 %v652_v3  ;;  %628 = vmatprep.subr.bf16.mxu1 %v652_v3  ;;  %v231_v21 = vld [vmem:[%s720_s30 + $0x10] sm:$0xff] }
  0x11   : > { %v252_v7 = vmul.f32 %v730_v6, %v229_v4  ;;  %v253_v8 = vmul.f32 %v730_v6, %v230_v5  ;;  %v237_v10 = vld [vmem:[%s720_s30 + $0x40] sm:$0xff]  ;;  %v238_v11 = vld [vmem:[%s720_s30 + $0x48] sm:$0xff]  ;;  %v232_v24 = vld [vmem:[%s720_s30 + $0x18] sm:$0xff]  ;;  %v254_v34 = vmul.f32 %v730_v6, %v231_v21 }
  0x12   : > { %v260_v12 = vmul.f32 %v730_v6, %v237_v10  ;;  %v261_v13 = vmul.f32 %v730_v6, %v238_v11  ;;  %v239_v25 = vld [vmem:[%s720_s30 + $0x50] sm:$0xff]  ;;  %v240_v26 = vld [vmem:[%s720_s30 + $0x58] sm:$0xff]  ;;  %v233_v29 = vld [vmem:[%s720_s30 + $0x20] sm:$0xff]  ;;  %v255_v35 = vmul.f32 %v730_v6, %v232_v24 }
  0x13   : > { %v275_v14 = vadd.f32 %v737_v9, %v252_v7  ;;  %v276_v15 = vadd.f32 %v737_v9, %v253_v8  ;;  %600 = vmatpush3.bf16.msra.mxu0 %v652_v3  ;;  %636 = vmatpush3.bf16.msra.mxu1 %v652_v3  ;;  %v234_v31 = vld [vmem:[%s720_s30 + $0x28] sm:$0xff]  ;;  %v241_v32 = vld [vmem:[%s720_s30 + $0x60] sm:$0xff]  ;;  %v262_v36 = vmul.f32 %v730_v6, %v239_v25  ;;  %v235_v48 = vld [vmem:[%s720_s30 + $0x30] sm:$0xff] }
  0x14   : > { %v283_v17 = vadd.f32 %v737_v9, %v260_v12  ;;  %v284_v18 = vadd.f32 %v737_v9, %v261_v13  ;;  %601 = vmatprep.subr.bf16.mxu0 %v653_v16  ;;  %629 = vmatprep.subr.bf16.mxu1 %v653_v16  ;;  %v242_v33 = vld [vmem:[%s720_s30 + $0x68] sm:$0xff]  ;;  %v263_v37 = vmul.f32 %v730_v6, %v240_v26  ;;  %v236_v52 = vld [vmem:[%s720_s30 + $0x38] sm:$0xff]  ;;  %v243_v53 = vld [vmem:[%s720_s30 + $0x70] sm:$0xff] }
  0x15   : > { %v291_v19 = vmax.f32 %v275_v14, 0.0  ;;  %v292_v20 = vmax.f32 %v276_v15, 0.0  ;;  %v256_v38 = vmul.f32 %v730_v6, %v233_v29  ;;  %v257_v39 = vmul.f32 %v730_v6, %v234_v31  ;;  %v244_v54 = vld [vmem:[%s720_s30 + $0x78] sm:$0xff] }
  0x16   : > { %v299_v22 = vmax.f32 %v283_v17, 0.0  ;;  %v300_v23 = vmax.f32 %v284_v18, 0.0  ;;  %v264_v40 = vmul.f32 %v730_v6, %v241_v32  ;;  %v265_v41 = vmul.f32 %v730_v6, %v242_v33 }
  0x17   : > { %v307_v28 = vpack.c.bf16 %v292_v20, %v291_v19  ;;  %602 = vmatpush3.bf16.msra.mxu0 %v653_v16  ;;  %637 = vmatpush3.bf16.msra.mxu1 %v653_v16  ;;  %v277_v43 = vadd.f32 %v737_v9, %v254_v34  ;;  %v278_v44 = vadd.f32 %v737_v9, %v255_v35 }
  0x18   : > { %v311_v30 = vpack.c.bf16 %v300_v23, %v299_v22  ;;  %603 = vmatprep.subr.bf16.mxu0 %v654_v27  ;;  %630 = vmatprep.subr.bf16.mxu1 %v654_v27  ;;  %v285_v45 = vadd.f32 %v737_v9, %v262_v36  ;;  %v286_v46 = vadd.f32 %v737_v9, %v263_v37 }
  0x19   : > { %609 = vmatprep.mubr.bf16.mxu0 %v307_v28  ;;  %v279_v47 = vadd.f32 %v737_v9, %v256_v38  ;;  %v280_v49 = vadd.f32 %v737_v9, %v257_v39  ;;  %v287_v50 = vadd.f32 %v737_v9, %v264_v40  ;;  %v288_v51 = vadd.f32 %v737_v9, %v265_v41 }
  0x1a   : > { %617 = vmatprep.mubr.bf16.mxu1 %v311_v30  ;;  %v293_v56 = vmax.f32 %v277_v43, 0.0  ;;  %v294_v57 = vmax.f32 %v278_v44, 0.0  ;;  %v301_v58 = vmax.f32 %v285_v45, 0.0  ;;  %v302_v59 = vmax.f32 %v286_v46, 0.0 }
  0x1b   : > { %604 = vmatpush3.bf16.msra.mxu0 %v654_v27  ;;  %638 = vmatpush3.bf16.msra.mxu1 %v654_v27  ;;  %v258_v60 = vmul.f32 %v730_v6, %v235_v48  ;;  %v259_v61 = vmul.f32 %v730_v6, %v236_v52  ;;  %v266_v62 = vmul.f32 %v730_v6, %v243_v53  ;;  %v295_v0 = vmax.f32 %v279_v47, 0.0 }
  0x1c   : > { %605 = vmatprep.subr.bf16.mxu0 %v655_v42  ;;  %631 = vmatprep.subr.bf16.mxu1 %v655_v42  ;;  %v267_v63 = vmul.f32 %v730_v6, %v244_v54  ;;  %v296_v1 = vmax.f32 %v280_v49, 0.0  ;;  %v303_v2 = vmax.f32 %v287_v50, 0.0  ;;  %v304_v3 = vmax.f32 %v288_v51, 0.0 }
  0x1d   : > { %v308_v4 = vpack.c.bf16 %v294_v57, %v293_v56  ;;  %v312_v5 = vpack.c.bf16 %v302_v59, %v301_v58  ;;  %v281_v7 = vadd.f32 %v737_v9, %v258_v60  ;;  %v282_v8 = vadd.f32 %v737_v9, %v259_v61 }
  0x1e   : > { %v289_v10 = vadd.f32 %v737_v9, %v266_v62  ;;  %v290_v11 = vadd.f32 %v737_v9, %v267_v63  ;;  %v309_v6 = vpack.c.bf16 %v296_v1, %v295_v0  ;;  %v313_v12 = vpack.c.bf16 %v304_v3, %v303_v2  ;;  %v566_v9 = vld [vmem:[%s828_s4] ss:$0 sm:$0xff] }
  0x1f   : > { %606 = vmatpush3.bf16.msra.mxu0 %v655_v42  ;;  %639 = vmatpush3.bf16.msra.mxu1 %v655_v42  ;;  %v297_v13 = vmax.f32 %v281_v7, 0.0  ;;  %v298_v14 = vmax.f32 %v282_v8, 0.0 }
  0x20   : > { %607 = vmatprep.subr.bf16.mxu0 %v656_v55  ;;  %632 = vmatprep.subr.bf16.mxu1 %v656_v55  ;;  %v305_v15 = vmax.f32 %v289_v10, 0.0  ;;  %v306_v16 = vmax.f32 %v290_v11, 0.0 }
  0x21   : > { %v310_v17 = vpack.c.bf16 %v298_v14, %v297_v13 }
  0x22   : > { %v314_v18 = vpack.c.bf16 %v306_v16, %v305_v15 }
  0x23   : > { %608 = vmatpush3.bf16.msra.mxu0 %v656_v55  ;;  %640 = vmatpush3.bf16.msra.mxu1 %v656_v55 }
  0x26   : > { %610 = vmatmul.mubr.bf16.vlgmr.msra.gmra.mrb[0].mxu0 %v308_v4  ;;  %618 = vmatmul.mubr.bf16.vlgmr.msra.gmra.mrb[0].mxu1 %v312_v5 }
  0x27   : > { %613 = vmatprep.mubr.bf16.mxu0 %v309_v6  ;;  %621 = vmatprep.mubr.bf16.mxu1 %v313_v12 }
  0x2e   : > { %614 = vmatmul.mubr.bf16.gmra.mrb[4].mxu0 %v310_v17  ;;  %622 = vmatmul.mubr.bf16.gmra.mrb[4].mxu1 %v314_v18 }
  0xf9   : > { %v611_v19 = vpop.f32.mrb[0].mxu0  ;;  %v619_v20 = vpop.f32.mrb[0].mxu1 }
  0xfa   : > { %v429_v21 = vadd.f32 %v611_v19, %v566_v9  ;;  %v461_v22 = vadd.f32 %v619_v20, %v566_v9  ;;  %v420_v23 = vpop.f32.mrb[1].mxu0  ;;  %v452_v24 = vpop.f32.mrb[1].mxu1 }
  0xfb   : > { %v421_v25 = vadd.f32 %v566_v9, %v420_v23  ;;  %v453_v26 = vadd.f32 %v566_v9, %v452_v24  ;;  %v612_v27 = vpop.f32.mrb[2].mxu0  ;;  %v620_v28 = vpop.f32.mrb[2].mxu1 }
  0xfc   : > { %485 = vst [vmem:[%s803_s26 + $0x10] sm:$0xff] %v429_v21  ;;  %493 = vst [vmem:[%s803_s26 + $0x50] sm:$0xff] %v461_v22  ;;  %v432_v29 = vadd.f32 %v612_v27, %v566_v9  ;;  %v464_v30 = vadd.f32 %v620_v28, %v566_v9  ;;  %v423_v31 = vpop.f32.mrb[3].mxu0  ;;  %v455_v32 = vpop.f32.mrb[3].mxu1 }
  0xfd   : > { %483 = vst [vmem:[%s803_s26] sm:$0xff] %v421_v25  ;;  %491 = vst [vmem:[%s803_s26 + $0x40] sm:$0xff] %v453_v26  ;;  %v424_v33 = vadd.f32 %v566_v9, %v423_v31  ;;  %v456_v34 = vadd.f32 %v566_v9, %v455_v32 }
  0xfe   : > { %486 = vst [vmem:[%s803_s26 + $0x18] sm:$0xff] %v432_v29  ;;  %494 = vst [vmem:[%s803_s26 + $0x58] sm:$0xff] %v464_v30 }
  0xff   : > { %484 = vst [vmem:[%s803_s26 + $0x8] sm:$0xff] %v424_v33  ;;  %492 = vst [vmem:[%s803_s26 + $0x48] sm:$0xff] %v456_v34 }
 0x101   : > { %v615_v35 = vpop.f32.mrb[4].mxu0  ;;  %v623_v36 = vpop.f32.mrb[4].mxu1 }
 0x102   : > { %v445_v37 = vadd.f32 %v615_v35, %v566_v9  ;;  %v477_v38 = vadd.f32 %v623_v36, %v566_v9  ;;  %v436_v39 = vpop.f32.mrb[5].mxu0  ;;  %v468_v40 = vpop.f32.mrb[5].mxu1 }
 0x103   : > { %v437_v41 = vadd.f32 %v566_v9, %v436_v39  ;;  %v469_v42 = vadd.f32 %v566_v9, %v468_v40  ;;  %v616_v43 = vpop.f32.mrb[6].mxu0  ;;  %v624_v44 = vpop.f32.mrb[6].mxu1 }
 0x104   : > { %489 = vst [vmem:[%s803_s26 + $0x30] sm:$0xff] %v445_v37  ;;  %497 = vst [vmem:[%s803_s26 + $0x70] sm:$0xff] %v477_v38  ;;  %v448_v45 = vadd.f32 %v616_v43, %v566_v9  ;;  %v480_v46 = vadd.f32 %v624_v44, %v566_v9  ;;  %v439_v47 = vpop.f32.mrb[7].mxu0  ;;  %v471_v48 = vpop.f32.mrb[7].mxu1 }
 0x105   : > { %487 = vst [vmem:[%s803_s26 + $0x20] sm:$0xff] %v437_v41  ;;  %495 = vst [vmem:[%s803_s26 + $0x60] sm:$0xff] %v469_v42  ;;  %v440_v49 = vadd.f32 %v566_v9, %v439_v47  ;;  %v472_v50 = vadd.f32 %v566_v9, %v471_v48 }
 0x106   : > { %490 = vst [vmem:[%s803_s26 + $0x38] sm:$0xff] %v448_v45  ;;  %498 = vst [vmem:[%s803_s26 + $0x78] sm:$0xff] %v480_v46 }
 0x107   : > { %488 = vst [vmem:[%s803_s26 + $0x28] sm:$0xff] %v440_v49  ;;  %496 = vst [vmem:[%s803_s26 + $0x68] sm:$0xff] %v472_v50 }
 0x108 PF: > { %s15_s18 = sadd.s32 1, %s663_s18  }
 0x109   : > { %p12_p4 = scmp.ge.s32.totalorder %s15_s18, 5  }
 0x10b   :  { %14 = sbr.rel (!%p12_p4) target bundleno = 1 (0x1), region = 70 }

</bundles_post_ra>
